<compile_context>
chip_gen: v6e
topology: v6e:2x2x1
jax: 0.10.0
libtpu: 0.0.40
codegen_flags: <defaults>
</compile_context>

<pallas_src>
import jax
import jax.numpy as jnp
from jax.experimental import pallas as pl
from jax.experimental.pallas import tpu as pltpu


# ----------------------------------------------------------------------------
# Spatial bookkeeping (input 1x32x32 so that the flatten is 16*6*6 = 576).
# ----------------------------------------------------------------------------
_W0 = 32                     # conv0 input row stride (32x32 image)
_L0 = 29 * _W0 + 30          # 958: conv0 output, 30x30 spatial, row stride 32
_L0M = 925                   # pool0 shifted-max length (covers p = 2y*32+2x <= 924)
_W1 = 15                     # pooled0 row stride (15x15, densely packed)
_L1 = 12 * _W1 + 13          # 193: conv1 output, 13x13 spatial, row stride 15
_L1M = 177                   # pool1 shifted-max length (covers p = 2y*15+2x <= 160)


# ----------------------------------------------------------------------------
# The fused kernel (one grid step == one image)
# ----------------------------------------------------------------------------
def mnist_fused_kernel(x_ref, w0_ref, b0_ref, w1_ref, b1_ref,
                       sel0_ref, sel1_ref, w2_ref, w3_ref, o_ref):
    f32 = jnp.float32
    bf16 = jnp.bfloat16

    x = x_ref[0]                                        # (1, 1024) f32
    w0 = w0_ref[...]                                    # (6, 9) f32, BN scale folded

    # conv0 (1->6, k3) + bn0 (folded) + relu0: VPU broadcast-FMA over 9 taps.
    z0 = jnp.zeros((6, _L0), f32)
    for t in range(9):
        di, dj = divmod(t, 3)
        off = di * _W0 + dj
        z0 = z0 + w0[:, t:t + 1] * x[:, off:off + _L0]  # (6,1)*(1,958) -> (6,958)
    z0 = jnp.maximum(z0 + b0_ref[...], 0.0)             # (6, 958)

    # maxp0 2x2/2: max of the 4 window corners, then exact 0/1 selection matmul.
    m0 = jnp.maximum(
        jnp.maximum(z0[:, 0:_L0M], z0[:, 1:1 + _L0M]),
        jnp.maximum(z0[:, _W0:_W0 + _L0M], z0[:, _W0 + 1:_W0 + 1 + _L0M]))
    p0 = jnp.dot(m0.astype(bf16), sel0_ref[...],
                 preferred_element_type=f32)            # (6, 225): 15x15, stride 15
    p0 = p0.astype(bf16)

    # conv1 (6->16, k3) + bn1 (folded) + relu1: 9 accumulating MXU matmuls.
    z1 = jnp.zeros((16, _L1), f32)
    for t in range(9):
        di, dj = divmod(t, 3)
        off = di * _W1 + dj
        z1 = z1 + jnp.dot(w1_ref[t], p0[:, off:off + _L1],
                          preferred_element_type=f32)   # (16,6)@(6,193)
    z1 = jnp.maximum(z1 + b1_ref[...], 0.0)             # (16, 193)

    # maxp1 2x2/2 (floor mode == windows at even offsets 0..10 of the 13x13 map).
    m1 = jnp.maximum(
        jnp.maximum(z1[:, 0:_L1M], z1[:, 1:1 + _L1M]),
        jnp.maximum(z1[:, _W1:_W1 + _L1M], z1[:, _W1 + 1:_W1 + 1 + _L1M]))
    p1 = jnp.dot(m1.astype(bf16), sel1_ref[...],
                 preferred_element_type=f32)            # (16, 36)
    p1 = p1.astype(bf16)

    # dense2 (576->120, no bias). The PyTorch NCHW flatten order is folded into
    # w2_ref's (channel, spatial, out) layout -> accumulate per channel.
    h = jnp.zeros((1, 120), f32)
    for c in range(16):
        h = h + jnp.dot(p1[c:c + 1, :], w2_ref[c], preferred_element_type=f32)
    # TODO(synk): Dropout(p=0.5) is identity in eval mode; training-mode
    #             stochastic dropout is not implemented.
    h = jnp.maximum(h, 0.0)

    # dense3 (120->10, no bias), output lane-padded to 128 (unmasked store).
    logits = jnp.dot(h.astype(bf16), w3_ref[...], preferred_element_type=f32)
    o_ref[...] = logits.reshape(1, 1, 128)


# ----------------------------------------------------------------------------
# pallas_call wrapper
# ----------------------------------------------------------------------------
def _const_spec(shape):
    zeros = (0,) * len(shape)
    return pl.BlockSpec(shape, lambda n, _z=zeros: _z)


def mnist_forward(x_nchw, kp):
    """x_nchw: (N, 1, 32, 32) float32 -> logits (N, 10)."""
    N = x_nchw.shape[0]
    x_flat = x_nchw.astype(jnp.float32).reshape(N, 1, 32 * 32)

    out = pl.pallas_call(
        mnist_fused_kernel,
        out_shape=jax.ShapeDtypeStruct((N, 1, 128), jnp.float32),
        grid=(N,),
        in_specs=[
            pl.BlockSpec((1, 1, 1024), lambda n: (n, 0, 0)),   # image
            _const_spec((6, 9)),                               # conv0 taps (f32)
            _const_spec((6, 1)),                               # bn0 bias
            _const_spec((9, 16, 6)),                           # conv1 taps (bf16)
            _const_spec((16, 1)),                              # bn1 bias
            _const_spec((_L0M, 225)),                          # pool0 selection
            _const_spec((_L1M, 36)),                           # pool1 selection
            _const_spec((16, 36, 120)),                        # dense2 (bf16)
            _const_spec((120, 128)),                           # dense3 padded (bf16)
        ],
        out_specs=pl.BlockSpec((1, 1, 128), lambda n: (n, 0, 0)),
        compiler_params=pltpu.CompilerParams(
            dimension_semantics=("parallel",)),
    )(x_flat, kp["w0"], kp["b0"], kp["w1"], kp["b1"],
      kp["sel0"], kp["sel1"], kp["w2"], kp["w3"])
    return out[:, 0, :10]


# ----------------------------------------------------------------------------
# Parameter preparation (hoisted out of the forward pass)
# ----------------------------------------------------------------------------
def _pool_selection_matrix(rows, cols, stride, length):
    """0/1 matrix S with S[2*y*stride + 2*x, y*cols + x] = 1 (exact decimation)."""
    yy, xx = jnp.meshgrid(jnp.arange(rows), jnp.arange(cols), indexing="ij")
    src = (2 * yy * stride + 2 * xx).reshape(-1)
    sel = jnp.zeros((length, rows * cols), jnp.float32)
    return sel.at[src, jnp.arange(rows * cols)].set(1.0)


def prepare_params(p, eps=1e-5):
    """Fold BN (running stats) into conv weights, bake the NCHW flatten order
    and the 128-lane padding into the dense weights, and precompute the exact
    pooling selection matrices.  Runs once at init."""
    s0 = p["gamma0"] / jnp.sqrt(p["rv0"] + eps)                         # (6,)
    b0 = (p["beta0"] - p["rm0"] * s0).reshape(6, 1).astype(jnp.float32)
    w0 = (p["w0"].reshape(6, 9) * s0[:, None]).astype(jnp.float32)      # tap t = di*3+dj

    s1 = p["gamma1"] / jnp.sqrt(p["rv1"] + eps)                         # (16,)
    b1 = (p["beta1"] - p["rm1"] * s1).reshape(16, 1).astype(jnp.float32)
    w1 = p["w1"] * s1[:, None, None, None]                              # (16,6,3,3)
    w1 = jnp.transpose(w1, (2, 3, 0, 1)).reshape(9, 16, 6).astype(jnp.bfloat16)

    sel0 = _pool_selection_matrix(15, 15, _W0, _L0M).astype(jnp.bfloat16)
    sel1 = _pool_selection_matrix(6, 6, _W1, _L1M).astype(jnp.bfloat16)

    # dense2: (120, 576) -> (16, 36, 120); row order (c, y*6+x) == NCHW flatten.
    w2 = jnp.transpose(p["w2"].reshape(120, 16, 36), (1, 2, 0)).astype(jnp.bfloat16)
    # dense3: (10, 120) -> (120, 128) lane-padded with zeros.
    w3 = jnp.zeros((120, 128), jnp.float32).at[:, :10].set(p["w3"].T)
    w3 = w3.astype(jnp.bfloat16)

    return {"w0": w0, "b0": b0, "w1": w1, "b1": b1,
            "sel0": sel0, "sel1": sel1, "w2": w2, "w3": w3}


# ----------------------------------------------------------------------------
# Deterministic parameter init + run
# ----------------------------------------------------------------------------
def init_params(key):
    ks = jax.random.split(key, 8)
    return {
        "w0": jax.random.normal(ks[0], (6, 1, 3, 3), jnp.float32) * 0.2,
        "gamma0": 1.0 + 0.1 * jax.random.normal(ks[1], (6,), jnp.float32),
        "beta0": 0.1 * jax.random.normal(ks[2], (6,), jnp.float32),
        "rm0": jnp.zeros((6,), jnp.float32),
        "rv0": jnp.ones((6,), jnp.float32),
        "w1": jax.random.normal(ks[3], (16, 6, 3, 3), jnp.float32) * 0.1,
        "gamma1": 1.0 + 0.1 * jax.random.normal(ks[4], (16,), jnp.float32),
        "beta1": 0.1 * jax.random.normal(ks[5], (16,), jnp.float32),
        "rm1": jnp.zeros((16,), jnp.float32),
        "rv1": jnp.ones((16,), jnp.float32),
        "w2": jax.random.normal(ks[6], (120, 576), jnp.float32) * 0.05,
        "w3": jax.random.normal(ks[7], (10, 120), jnp.float32) * 0.1,
    }


if __name__ == "__main__":
    key = jax.random.PRNGKey(0)
    pkey, xkey = jax.random.split(key)
    params = init_params(pkey)
    kparams = prepare_params(params)
    # 32x32 single-channel input (required so that flatten == 16*6*6 = 576)
    x = jax.random.normal(xkey, (2, 1, 32, 32), jnp.float32)

    out = jax.jit(mnist_forward)(x, kparams)
    out = jax.block_until_ready(out)
    assert out.shape == (2, 10) and out.dtype == jnp.float32
    print("KERNEL_OK")
</pallas_src>

<mosaic_0001>
module attributes {stable_mosaic.version = 11 : i64} {
  func.func @mnist_fused_kernel(%arg0: i32, %arg1: memref<1x1x1024xf32, #tpu.memory_space<vmem>>, %arg2: memref<6x9xf32, #tpu.memory_space<vmem>>, %arg3: memref<6x1xf32, #tpu.memory_space<vmem>>, %arg4: memref<9x16x6xbf16, #tpu.memory_space<vmem>>, %arg5: memref<16x1xf32, #tpu.memory_space<vmem>>, %arg6: memref<925x225xbf16, #tpu.memory_space<vmem>>, %arg7: memref<177x36xbf16, #tpu.memory_space<vmem>>, %arg8: memref<16x36x120xbf16, #tpu.memory_space<vmem>>, %arg9: memref<120x128xbf16, #tpu.memory_space<vmem>>, %arg10: memref<1x1x128xf32, #tpu.memory_space<vmem>>) attributes {dimension_semantics = [#tpu.dimension_semantics<parallel>], iteration_bounds = array<i64: 2>, scalar_prefetch = 0 : i64, scratch_operands = 0 : i64, tpu.core_type = #tpu.core_type<tc>, window_params = [{transform_indices = @transform_0, window_bounds = array<i64: 1, 1, 1024>}, {pipeline_mode = #tpu.pipeline_mode<synchronous>, transform_indices = @transform_1, window_bounds = array<i64: 6, 9>}, {pipeline_mode = #tpu.pipeline_mode<synchronous>, transform_indices = @transform_2, window_bounds = array<i64: 6, 1>}, {pipeline_mode = #tpu.pipeline_mode<synchronous>, transform_indices = @transform_3, window_bounds = array<i64: 9, 16, 6>}, {pipeline_mode = #tpu.pipeline_mode<synchronous>, transform_indices = @transform_4, window_bounds = array<i64: 16, 1>}, {pipeline_mode = #tpu.pipeline_mode<synchronous>, transform_indices = @transform_5, window_bounds = array<i64: 925, 225>}, {pipeline_mode = #tpu.pipeline_mode<synchronous>, transform_indices = @transform_6, window_bounds = array<i64: 177, 36>}, {pipeline_mode = #tpu.pipeline_mode<synchronous>, transform_indices = @transform_7, window_bounds = array<i64: 16, 36, 120>}, {pipeline_mode = #tpu.pipeline_mode<synchronous>, transform_indices = @transform_8, window_bounds = array<i64: 120, 128>}, {transform_indices = @transform_9, window_bounds = array<i64: 1, 1, 128>}]} {
    %c0 = arith.constant 0 : index
    %c0_0 = arith.constant 0 : index
    %c0_1 = arith.constant 0 : index
    %0 = vector.load %arg1[%c0, %c0_0, %c0_1] : memref<1x1x1024xf32, #tpu.memory_space<vmem>>, vector<1x1x1024xf32>
    %1 = vector.shape_cast %0 : vector<1x1x1024xf32> to vector<1x1024xf32>
    %c0_2 = arith.constant 0 : index
    %c0_3 = arith.constant 0 : index
    %2 = vector.load %arg2[%c0_2, %c0_3] : memref<6x9xf32, #tpu.memory_space<vmem>>, vector<6x9xf32>
    %cst = arith.constant 0.000000e+00 : f32
    %3 = vector.broadcast %cst : f32 to vector<6x958xf32>
    %4 = vector.extract_strided_slice %2 {offsets = [0, 0], sizes = [6, 1], strides = [1, 1]} : vector<6x9xf32> to vector<6x1xf32>
    %5 = vector.extract_strided_slice %1 {offsets = [0, 0], sizes = [1, 958], strides = [1, 1]} : vector<1x1024xf32> to vector<1x958xf32>
    %6 = vector.broadcast %4 : vector<6x1xf32> to vector<6x958xf32>
    %7 = vector.broadcast %5 : vector<1x958xf32> to vector<6x958xf32>
    %8 = arith.mulf %6, %7 : vector<6x958xf32>
    %9 = arith.addf %3, %8 : vector<6x958xf32>
    %10 = vector.extract_strided_slice %2 {offsets = [0, 1], sizes = [6, 1], strides = [1, 1]} : vector<6x9xf32> to vector<6x1xf32>
    %11 = vector.extract_strided_slice %1 {offsets = [0, 1], sizes = [1, 958], strides = [1, 1]} : vector<1x1024xf32> to vector<1x958xf32>
    %12 = vector.broadcast %10 : vector<6x1xf32> to vector<6x958xf32>
    %13 = vector.broadcast %11 : vector<1x958xf32> to vector<6x958xf32>
    %14 = arith.mulf %12, %13 : vector<6x958xf32>
    %15 = arith.addf %9, %14 : vector<6x958xf32>
    %16 = vector.extract_strided_slice %2 {offsets = [0, 2], sizes = [6, 1], strides = [1, 1]} : vector<6x9xf32> to vector<6x1xf32>
    %17 = vector.extract_strided_slice %1 {offsets = [0, 2], sizes = [1, 958], strides = [1, 1]} : vector<1x1024xf32> to vector<1x958xf32>
    %18 = vector.broadcast %16 : vector<6x1xf32> to vector<6x958xf32>
    %19 = vector.broadcast %17 : vector<1x958xf32> to vector<6x958xf32>
    %20 = arith.mulf %18, %19 : vector<6x958xf32>
    %21 = arith.addf %15, %20 : vector<6x958xf32>
    %22 = vector.extract_strided_slice %2 {offsets = [0, 3], sizes = [6, 1], strides = [1, 1]} : vector<6x9xf32> to vector<6x1xf32>
    %23 = vector.extract_strided_slice %1 {offsets = [0, 32], sizes = [1, 958], strides = [1, 1]} : vector<1x1024xf32> to vector<1x958xf32>
    %24 = vector.broadcast %22 : vector<6x1xf32> to vector<6x958xf32>
    %25 = vector.broadcast %23 : vector<1x958xf32> to vector<6x958xf32>
    %26 = arith.mulf %24, %25 : vector<6x958xf32>
    %27 = arith.addf %21, %26 : vector<6x958xf32>
    %28 = vector.extract_strided_slice %2 {offsets = [0, 4], sizes = [6, 1], strides = [1, 1]} : vector<6x9xf32> to vector<6x1xf32>
    %29 = vector.extract_strided_slice %1 {offsets = [0, 33], sizes = [1, 958], strides = [1, 1]} : vector<1x1024xf32> to vector<1x958xf32>
    %30 = vector.broadcast %28 : vector<6x1xf32> to vector<6x958xf32>
    %31 = vector.broadcast %29 : vector<1x958xf32> to vector<6x958xf32>
    %32 = arith.mulf %30, %31 : vector<6x958xf32>
    %33 = arith.addf %27, %32 : vector<6x958xf32>
    %34 = vector.extract_strided_slice %2 {offsets = [0, 5], sizes = [6, 1], strides = [1, 1]} : vector<6x9xf32> to vector<6x1xf32>
    %35 = vector.extract_strided_slice %1 {offsets = [0, 34], sizes = [1, 958], strides = [1, 1]} : vector<1x1024xf32> to vector<1x958xf32>
    %36 = vector.broadcast %34 : vector<6x1xf32> to vector<6x958xf32>
    %37 = vector.broadcast %35 : vector<1x958xf32> to vector<6x958xf32>
    %38 = arith.mulf %36, %37 : vector<6x958xf32>
    %39 = arith.addf %33, %38 : vector<6x958xf32>
    %40 = vector.extract_strided_slice %2 {offsets = [0, 6], sizes = [6, 1], strides = [1, 1]} : vector<6x9xf32> to vector<6x1xf32>
    %41 = vector.extract_strided_slice %1 {offsets = [0, 64], sizes = [1, 958], strides = [1, 1]} : vector<1x1024xf32> to vector<1x958xf32>
    %42 = vector.broadcast %40 : vector<6x1xf32> to vector<6x958xf32>
    %43 = vector.broadcast %41 : vector<1x958xf32> to vector<6x958xf32>
    %44 = arith.mulf %42, %43 : vector<6x958xf32>
    %45 = arith.addf %39, %44 : vector<6x958xf32>
    %46 = vector.extract_strided_slice %2 {offsets = [0, 7], sizes = [6, 1], strides = [1, 1]} : vector<6x9xf32> to vector<6x1xf32>
    %47 = vector.extract_strided_slice %1 {offsets = [0, 65], sizes = [1, 958], strides = [1, 1]} : vector<1x1024xf32> to vector<1x958xf32>
    %48 = vector.broadcast %46 : vector<6x1xf32> to vector<6x958xf32>
    %49 = vector.broadcast %47 : vector<1x958xf32> to vector<6x958xf32>
    %50 = arith.mulf %48, %49 : vector<6x958xf32>
    %51 = arith.addf %45, %50 : vector<6x958xf32>
    %52 = vector.extract_strided_slice %2 {offsets = [0, 8], sizes = [6, 1], strides = [1, 1]} : vector<6x9xf32> to vector<6x1xf32>
    %53 = vector.extract_strided_slice %1 {offsets = [0, 66], sizes = [1, 958], strides = [1, 1]} : vector<1x1024xf32> to vector<1x958xf32>
    %54 = vector.broadcast %52 : vector<6x1xf32> to vector<6x958xf32>
    %55 = vector.broadcast %53 : vector<1x958xf32> to vector<6x958xf32>
    %56 = arith.mulf %54, %55 : vector<6x958xf32>
    %57 = arith.addf %51, %56 : vector<6x958xf32>
    %c0_4 = arith.constant 0 : index
    %c0_5 = arith.constant 0 : index
    %58 = vector.load %arg3[%c0_4, %c0_5] : memref<6x1xf32, #tpu.memory_space<vmem>>, vector<6x1xf32>
    %59 = vector.broadcast %58 : vector<6x1xf32> to vector<6x958xf32>
    %60 = arith.addf %57, %59 : vector<6x958xf32>
    %cst_6 = arith.constant 0.000000e+00 : f32
    %61 = vector.broadcast %cst_6 : f32 to vector<6x958xf32>
    %62 = arith.maximumf %60, %61 : vector<6x958xf32>
    %63 = vector.extract_strided_slice %62 {offsets = [0, 0], sizes = [6, 925], strides = [1, 1]} : vector<6x958xf32> to vector<6x925xf32>
    %64 = vector.extract_strided_slice %62 {offsets = [0, 1], sizes = [6, 925], strides = [1, 1]} : vector<6x958xf32> to vector<6x925xf32>
    %65 = arith.maximumf %63, %64 : vector<6x925xf32>
    %66 = vector.extract_strided_slice %62 {offsets = [0, 32], sizes = [6, 925], strides = [1, 1]} : vector<6x958xf32> to vector<6x925xf32>
    %67 = vector.extract_strided_slice %62 {offsets = [0, 33], sizes = [6, 925], strides = [1, 1]} : vector<6x958xf32> to vector<6x925xf32>
    %68 = arith.maximumf %66, %67 : vector<6x925xf32>
    %69 = arith.maximumf %65, %68 : vector<6x925xf32>
    %70 = arith.truncf %69 : vector<6x925xf32> to vector<6x925xbf16>
    %c0_7 = arith.constant 0 : index
    %c0_8 = arith.constant 0 : index
    %71 = vector.load %arg6[%c0_7, %c0_8] : memref<925x225xbf16, #tpu.memory_space<vmem>>, vector<925x225xbf16>
    %cst_9 = arith.constant dense<0.000000e+00> : vector<6x225xf32>
    %72 = tpu.matmul %70, %71, %cst_9 {dimension_numbers = #tpu.dot_dimension_numbers<[1], [0], [0], [1], [0, 0, 1, 1], [], []>} : vector<6x925xbf16>, vector<925x225xbf16>, vector<6x225xf32> -> vector<6x225xf32>
    %73 = arith.truncf %72 : vector<6x225xf32> to vector<6x225xbf16>
    %cst_10 = arith.constant 0.000000e+00 : f32
    %74 = vector.broadcast %cst_10 : f32 to vector<16x193xf32>
    %c0_11 = arith.constant 0 : index
    %c0_12 = arith.constant 0 : index
    %c0_13 = arith.constant 0 : index
    %75 = vector.load %arg4[%c0_11, %c0_12, %c0_13] : memref<9x16x6xbf16, #tpu.memory_space<vmem>>, vector<1x16x6xbf16>
    %76 = vector.shape_cast %75 : vector<1x16x6xbf16> to vector<16x6xbf16>
    %77 = vector.extract_strided_slice %73 {offsets = [0, 0], sizes = [6, 193], strides = [1, 1]} : vector<6x225xbf16> to vector<6x193xbf16>
    %cst_14 = arith.constant dense<0.000000e+00> : vector<16x193xf32>
    %78 = tpu.matmul %76, %77, %cst_14 {dimension_numbers = #tpu.dot_dimension_numbers<[1], [0], [0], [1], [0, 0, 1, 1], [], []>} : vector<16x6xbf16>, vector<6x193xbf16>, vector<16x193xf32> -> vector<16x193xf32>
    %79 = arith.addf %74, %78 : vector<16x193xf32>
    %c1 = arith.constant 1 : index
    %c0_15 = arith.constant 0 : index
    %c0_16 = arith.constant 0 : index
    %80 = vector.load %arg4[%c1, %c0_15, %c0_16] : memref<9x16x6xbf16, #tpu.memory_space<vmem>>, vector<1x16x6xbf16>
    %81 = vector.shape_cast %80 : vector<1x16x6xbf16> to vector<16x6xbf16>
    %82 = vector.extract_strided_slice %73 {offsets = [0, 1], sizes = [6, 193], strides = [1, 1]} : vector<6x225xbf16> to vector<6x193xbf16>
    %cst_17 = arith.constant dense<0.000000e+00> : vector<16x193xf32>
    %83 = tpu.matmul %81, %82, %cst_17 {dimension_numbers = #tpu.dot_dimension_numbers<[1], [0], [0], [1], [0, 0, 1, 1], [], []>} : vector<16x6xbf16>, vector<6x193xbf16>, vector<16x193xf32> -> vector<16x193xf32>
    %84 = arith.addf %79, %83 : vector<16x193xf32>
    %c2 = arith.constant 2 : index
    %c0_18 = arith.constant 0 : index
    %c0_19 = arith.constant 0 : index
    %85 = vector.load %arg4[%c2, %c0_18, %c0_19] : memref<9x16x6xbf16, #tpu.memory_space<vmem>>, vector<1x16x6xbf16>
    %86 = vector.shape_cast %85 : vector<1x16x6xbf16> to vector<16x6xbf16>
    %87 = vector.extract_strided_slice %73 {offsets = [0, 2], sizes = [6, 193], strides = [1, 1]} : vector<6x225xbf16> to vector<6x193xbf16>
    %cst_20 = arith.constant dense<0.000000e+00> : vector<16x193xf32>
    %88 = tpu.matmul %86, %87, %cst_20 {dimension_numbers = #tpu.dot_dimension_numbers<[1], [0], [0], [1], [0, 0, 1, 1], [], []>} : vector<16x6xbf16>, vector<6x193xbf16>, vector<16x193xf32> -> vector<16x193xf32>
    %89 = arith.addf %84, %88 : vector<16x193xf32>
    %c3 = arith.constant 3 : index
    %c0_21 = arith.constant 0 : index
    %c0_22 = arith.constant 0 : index
    %90 = vector.load %arg4[%c3, %c0_21, %c0_22] : memref<9x16x6xbf16, #tpu.memory_space<vmem>>, vector<1x16x6xbf16>
    %91 = vector.shape_cast %90 : vector<1x16x6xbf16> to vector<16x6xbf16>
    %92 = vector.extract_strided_slice %73 {offsets = [0, 15], sizes = [6, 193], strides = [1, 1]} : vector<6x225xbf16> to vector<6x193xbf16>
    %cst_23 = arith.constant dense<0.000000e+00> : vector<16x193xf32>
    %93 = tpu.matmul %91, %92, %cst_23 {dimension_numbers = #tpu.dot_dimension_numbers<[1], [0], [0], [1], [0, 0, 1, 1], [], []>} : vector<16x6xbf16>, vector<6x193xbf16>, vector<16x193xf32> -> vector<16x193xf32>
    %94 = arith.addf %89, %93 : vector<16x193xf32>
    %c4 = arith.constant 4 : index
    %c0_24 = arith.constant 0 : index
    %c0_25 = arith.constant 0 : index
    %95 = vector.load %arg4[%c4, %c0_24, %c0_25] : memref<9x16x6xbf16, #tpu.memory_space<vmem>>, vector<1x16x6xbf16>
    %96 = vector.shape_cast %95 : vector<1x16x6xbf16> to vector<16x6xbf16>
    %97 = vector.extract_strided_slice %73 {offsets = [0, 16], sizes = [6, 193], strides = [1, 1]} : vector<6x225xbf16> to vector<6x193xbf16>
    %cst_26 = arith.constant dense<0.000000e+00> : vector<16x193xf32>
    %98 = tpu.matmul %96, %97, %cst_26 {dimension_numbers = #tpu.dot_dimension_numbers<[1], [0], [0], [1], [0, 0, 1, 1], [], []>} : vector<16x6xbf16>, vector<6x193xbf16>, vector<16x193xf32> -> vector<16x193xf32>
    %99 = arith.addf %94, %98 : vector<16x193xf32>
    %c5 = arith.constant 5 : index
    %c0_27 = arith.constant 0 : index
    %c0_28 = arith.constant 0 : index
    %100 = vector.load %arg4[%c5, %c0_27, %c0_28] : memref<9x16x6xbf16, #tpu.memory_space<vmem>>, vector<1x16x6xbf16>
    %101 = vector.shape_cast %100 : vector<1x16x6xbf16> to vector<16x6xbf16>
    %102 = vector.extract_strided_slice %73 {offsets = [0, 17], sizes = [6, 193], strides = [1, 1]} : vector<6x225xbf16> to vector<6x193xbf16>
    %cst_29 = arith.constant dense<0.000000e+00> : vector<16x193xf32>
    %103 = tpu.matmul %101, %102, %cst_29 {dimension_numbers = #tpu.dot_dimension_numbers<[1], [0], [0], [1], [0, 0, 1, 1], [], []>} : vector<16x6xbf16>, vector<6x193xbf16>, vector<16x193xf32> -> vector<16x193xf32>
    %104 = arith.addf %99, %103 : vector<16x193xf32>
    %c6 = arith.constant 6 : index
    %c0_30 = arith.constant 0 : index
    %c0_31 = arith.constant 0 : index
    %105 = vector.load %arg4[%c6, %c0_30, %c0_31] : memref<9x16x6xbf16, #tpu.memory_space<vmem>>, vector<1x16x6xbf16>
    %106 = vector.shape_cast %105 : vector<1x16x6xbf16> to vector<16x6xbf16>
    %107 = vector.extract_strided_slice %73 {offsets = [0, 30], sizes = [6, 193], strides = [1, 1]} : vector<6x225xbf16> to vector<6x193xbf16>
    %cst_32 = arith.constant dense<0.000000e+00> : vector<16x193xf32>
    %108 = tpu.matmul %106, %107, %cst_32 {dimension_numbers = #tpu.dot_dimension_numbers<[1], [0], [0], [1], [0, 0, 1, 1], [], []>} : vector<16x6xbf16>, vector<6x193xbf16>, vector<16x193xf32> -> vector<16x193xf32>
    %109 = arith.addf %104, %108 : vector<16x193xf32>
    %c7 = arith.constant 7 : index
    %c0_33 = arith.constant 0 : index
    %c0_34 = arith.constant 0 : index
    %110 = vector.load %arg4[%c7, %c0_33, %c0_34] : memref<9x16x6xbf16, #tpu.memory_space<vmem>>, vector<1x16x6xbf16>
    %111 = vector.shape_cast %110 : vector<1x16x6xbf16> to vector<16x6xbf16>
    %112 = vector.extract_strided_slice %73 {offsets = [0, 31], sizes = [6, 193], strides = [1, 1]} : vector<6x225xbf16> to vector<6x193xbf16>
    %cst_35 = arith.constant dense<0.000000e+00> : vector<16x193xf32>
    %113 = tpu.matmul %111, %112, %cst_35 {dimension_numbers = #tpu.dot_dimension_numbers<[1], [0], [0], [1], [0, 0, 1, 1], [], []>} : vector<16x6xbf16>, vector<6x193xbf16>, vector<16x193xf32> -> vector<16x193xf32>
    %114 = arith.addf %109, %113 : vector<16x193xf32>
    %c8 = arith.constant 8 : index
    %c0_36 = arith.constant 0 : index
    %c0_37 = arith.constant 0 : index
    %115 = vector.load %arg4[%c8, %c0_36, %c0_37] : memref<9x16x6xbf16, #tpu.memory_space<vmem>>, vector<1x16x6xbf16>
    %116 = vector.shape_cast %115 : vector<1x16x6xbf16> to vector<16x6xbf16>
    %117 = vector.extract_strided_slice %73 {offsets = [0, 32], sizes = [6, 193], strides = [1, 1]} : vector<6x225xbf16> to vector<6x193xbf16>
    %cst_38 = arith.constant dense<0.000000e+00> : vector<16x193xf32>
    %118 = tpu.matmul %116, %117, %cst_38 {dimension_numbers = #tpu.dot_dimension_numbers<[1], [0], [0], [1], [0, 0, 1, 1], [], []>} : vector<16x6xbf16>, vector<6x193xbf16>, vector<16x193xf32> -> vector<16x193xf32>
    %119 = arith.addf %114, %118 : vector<16x193xf32>
    %c0_39 = arith.constant 0 : index
    %c0_40 = arith.constant 0 : index
    %120 = vector.load %arg5[%c0_39, %c0_40] : memref<16x1xf32, #tpu.memory_space<vmem>>, vector<16x1xf32>
    %121 = vector.broadcast %120 : vector<16x1xf32> to vector<16x193xf32>
    %122 = arith.addf %119, %121 : vector<16x193xf32>
    %cst_41 = arith.constant 0.000000e+00 : f32
    %123 = vector.broadcast %cst_41 : f32 to vector<16x193xf32>
    %124 = arith.maximumf %122, %123 : vector<16x193xf32>
    %125 = vector.extract_strided_slice %124 {offsets = [0, 0], sizes = [16, 177], strides = [1, 1]} : vector<16x193xf32> to vector<16x177xf32>
    %126 = vector.extract_strided_slice %124 {offsets = [0, 1], sizes = [16, 177], strides = [1, 1]} : vector<16x193xf32> to vector<16x177xf32>
    %127 = arith.maximumf %125, %126 : vector<16x177xf32>
    %128 = vector.extract_strided_slice %124 {offsets = [0, 15], sizes = [16, 177], strides = [1, 1]} : vector<16x193xf32> to vector<16x177xf32>
    %129 = vector.extract_strided_slice %124 {offsets = [0, 16], sizes = [16, 177], strides = [1, 1]} : vector<16x193xf32> to vector<16x177xf32>
    %130 = arith.maximumf %128, %129 : vector<16x177xf32>
    %131 = arith.maximumf %127, %130 : vector<16x177xf32>
    %132 = arith.truncf %131 : vector<16x177xf32> to vector<16x177xbf16>
    %c0_42 = arith.constant 0 : index
    %c0_43 = arith.constant 0 : index
    %133 = vector.load %arg7[%c0_42, %c0_43] : memref<177x36xbf16, #tpu.memory_space<vmem>>, vector<177x36xbf16>
    %cst_44 = arith.constant dense<0.000000e+00> : vector<16x36xf32>
    %134 = tpu.matmul %132, %133, %cst_44 {dimension_numbers = #tpu.dot_dimension_numbers<[1], [0], [0], [1], [0, 0, 1, 1], [], []>} : vector<16x177xbf16>, vector<177x36xbf16>, vector<16x36xf32> -> vector<16x36xf32>
    %135 = arith.truncf %134 : vector<16x36xf32> to vector<16x36xbf16>
    %cst_45 = arith.constant 0.000000e+00 : f32
    %136 = vector.broadcast %cst_45 : f32 to vector<1x120xf32>
    %137 = vector.extract_strided_slice %135 {offsets = [0, 0], sizes = [1, 36], strides = [1, 1]} : vector<16x36xbf16> to vector<1x36xbf16>
    %c0_46 = arith.constant 0 : index
    %c0_47 = arith.constant 0 : index
    %c0_48 = arith.constant 0 : index
    %138 = vector.load %arg8[%c0_46, %c0_47, %c0_48] : memref<16x36x120xbf16, #tpu.memory_space<vmem>>, vector<1x36x120xbf16>
    %139 = vector.shape_cast %138 : vector<1x36x120xbf16> to vector<36x120xbf16>
    %cst_49 = arith.constant dense<0.000000e+00> : vector<1x120xf32>
    %140 = tpu.matmul %137, %139, %cst_49 {dimension_numbers = #tpu.dot_dimension_numbers<[1], [0], [0], [1], [0, 0, 1, 1], [], []>} : vector<1x36xbf16>, vector<36x120xbf16>, vector<1x120xf32> -> vector<1x120xf32>
    %141 = arith.addf %136, %140 : vector<1x120xf32>
    %142 = vector.extract_strided_slice %135 {offsets = [1, 0], sizes = [1, 36], strides = [1, 1]} : vector<16x36xbf16> to vector<1x36xbf16>
    %c1_50 = arith.constant 1 : index
    %c0_51 = arith.constant 0 : index
    %c0_52 = arith.constant 0 : index
    %143 = vector.load %arg8[%c1_50, %c0_51, %c0_52] : memref<16x36x120xbf16, #tpu.memory_space<vmem>>, vector<1x36x120xbf16>
    %144 = vector.shape_cast %143 : vector<1x36x120xbf16> to vector<36x120xbf16>
    %cst_53 = arith.constant dense<0.000000e+00> : vector<1x120xf32>
    %145 = tpu.matmul %142, %144, %cst_53 {dimension_numbers = #tpu.dot_dimension_numbers<[1], [0], [0], [1], [0, 0, 1, 1], [], []>} : vector<1x36xbf16>, vector<36x120xbf16>, vector<1x120xf32> -> vector<1x120xf32>
    %146 = arith.addf %141, %145 : vector<1x120xf32>
    %147 = vector.extract_strided_slice %135 {offsets = [2, 0], sizes = [1, 36], strides = [1, 1]} : vector<16x36xbf16> to vector<1x36xbf16>
    %c2_54 = arith.constant 2 : index
    %c0_55 = arith.constant 0 : index
    %c0_56 = arith.constant 0 : index
    %148 = vector.load %arg8[%c2_54, %c0_55, %c0_56] : memref<16x36x120xbf16, #tpu.memory_space<vmem>>, vector<1x36x120xbf16>
    %149 = vector.shape_cast %148 : vector<1x36x120xbf16> to vector<36x120xbf16>
    %cst_57 = arith.constant dense<0.000000e+00> : vector<1x120xf32>
    %150 = tpu.matmul %147, %149, %cst_57 {dimension_numbers = #tpu.dot_dimension_numbers<[1], [0], [0], [1], [0, 0, 1, 1], [], []>} : vector<1x36xbf16>, vector<36x120xbf16>, vector<1x120xf32> -> vector<1x120xf32>
    %151 = arith.addf %146, %150 : vector<1x120xf32>
    %152 = vector.extract_strided_slice %135 {offsets = [3, 0], sizes = [1, 36], strides = [1, 1]} : vector<16x36xbf16> to vector<1x36xbf16>
    %c3_58 = arith.constant 3 : index
    %c0_59 = arith.constant 0 : index
    %c0_60 = arith.constant 0 : index
    %153 = vector.load %arg8[%c3_58, %c0_59, %c0_60] : memref<16x36x120xbf16, #tpu.memory_space<vmem>>, vector<1x36x120xbf16>
    %154 = vector.shape_cast %153 : vector<1x36x120xbf16> to vector<36x120xbf16>
    %cst_61 = arith.constant dense<0.000000e+00> : vector<1x120xf32>
    %155 = tpu.matmul %152, %154, %cst_61 {dimension_numbers = #tpu.dot_dimension_numbers<[1], [0], [0], [1], [0, 0, 1, 1], [], []>} : vector<1x36xbf16>, vector<36x120xbf16>, vector<1x120xf32> -> vector<1x120xf32>
    %156 = arith.addf %151, %155 : vector<1x120xf32>
    %157 = vector.extract_strided_slice %135 {offsets = [4, 0], sizes = [1, 36], strides = [1, 1]} : vector<16x36xbf16> to vector<1x36xbf16>
    %c4_62 = arith.constant 4 : index
    %c0_63 = arith.constant 0 : index
    %c0_64 = arith.constant 0 : index
    %158 = vector.load %arg8[%c4_62, %c0_63, %c0_64] : memref<16x36x120xbf16, #tpu.memory_space<vmem>>, vector<1x36x120xbf16>
    %159 = vector.shape_cast %158 : vector<1x36x120xbf16> to vector<36x120xbf16>
    %cst_65 = arith.constant dense<0.000000e+00> : vector<1x120xf32>
    %160 = tpu.matmul %157, %159, %cst_65 {dimension_numbers = #tpu.dot_dimension_numbers<[1], [0], [0], [1], [0, 0, 1, 1], [], []>} : vector<1x36xbf16>, vector<36x120xbf16>, vector<1x120xf32> -> vector<1x120xf32>
    %161 = arith.addf %156, %160 : vector<1x120xf32>
    %162 = vector.extract_strided_slice %135 {offsets = [5, 0], sizes = [1, 36], strides = [1, 1]} : vector<16x36xbf16> to vector<1x36xbf16>
    %c5_66 = arith.constant 5 : index
    %c0_67 = arith.constant 0 : index
    %c0_68 = arith.constant 0 : index
    %163 = vector.load %arg8[%c5_66, %c0_67, %c0_68] : memref<16x36x120xbf16, #tpu.memory_space<vmem>>, vector<1x36x120xbf16>
    %164 = vector.shape_cast %163 : vector<1x36x120xbf16> to vector<36x120xbf16>
    %cst_69 = arith.constant dense<0.000000e+00> : vector<1x120xf32>
    %165 = tpu.matmul %162, %164, %cst_69 {dimension_numbers = #tpu.dot_dimension_numbers<[1], [0], [0], [1], [0, 0, 1, 1], [], []>} : vector<1x36xbf16>, vector<36x120xbf16>, vector<1x120xf32> -> vector<1x120xf32>
    %166 = arith.addf %161, %165 : vector<1x120xf32>
    %167 = vector.extract_strided_slice %135 {offsets = [6, 0], sizes = [1, 36], strides = [1, 1]} : vector<16x36xbf16> to vector<1x36xbf16>
    %c6_70 = arith.constant 6 : index
    %c0_71 = arith.constant 0 : index
    %c0_72 = arith.constant 0 : index
    %168 = vector.load %arg8[%c6_70, %c0_71, %c0_72] : memref<16x36x120xbf16, #tpu.memory_space<vmem>>, vector<1x36x120xbf16>
    %169 = vector.shape_cast %168 : vector<1x36x120xbf16> to vector<36x120xbf16>
    %cst_73 = arith.constant dense<0.000000e+00> : vector<1x120xf32>
    %170 = tpu.matmul %167, %169, %cst_73 {dimension_numbers = #tpu.dot_dimension_numbers<[1], [0], [0], [1], [0, 0, 1, 1], [], []>} : vector<1x36xbf16>, vector<36x120xbf16>, vector<1x120xf32> -> vector<1x120xf32>
    %171 = arith.addf %166, %170 : vector<1x120xf32>
    %172 = vector.extract_strided_slice %135 {offsets = [7, 0], sizes = [1, 36], strides = [1, 1]} : vector<16x36xbf16> to vector<1x36xbf16>
    %c7_74 = arith.constant 7 : index
    %c0_75 = arith.constant 0 : index
    %c0_76 = arith.constant 0 : index
    %173 = vector.load %arg8[%c7_74, %c0_75, %c0_76] : memref<16x36x120xbf16, #tpu.memory_space<vmem>>, vector<1x36x120xbf16>
    %174 = vector.shape_cast %173 : vector<1x36x120xbf16> to vector<36x120xbf16>
    %cst_77 = arith.constant dense<0.000000e+00> : vector<1x120xf32>
    %175 = tpu.matmul %172, %174, %cst_77 {dimension_numbers = #tpu.dot_dimension_numbers<[1], [0], [0], [1], [0, 0, 1, 1], [], []>} : vector<1x36xbf16>, vector<36x120xbf16>, vector<1x120xf32> -> vector<1x120xf32>
    %176 = arith.addf %171, %175 : vector<1x120xf32>
    %177 = vector.extract_strided_slice %135 {offsets = [8, 0], sizes = [1, 36], strides = [1, 1]} : vector<16x36xbf16> to vector<1x36xbf16>
    %c8_78 = arith.constant 8 : index
    %c0_79 = arith.constant 0 : index
    %c0_80 = arith.constant 0 : index
    %178 = vector.load %arg8[%c8_78, %c0_79, %c0_80] : memref<16x36x120xbf16, #tpu.memory_space<vmem>>, vector<1x36x120xbf16>
    %179 = vector.shape_cast %178 : vector<1x36x120xbf16> to vector<36x120xbf16>
    %cst_81 = arith.constant dense<0.000000e+00> : vector<1x120xf32>
    %180 = tpu.matmul %177, %179, %cst_81 {dimension_numbers = #tpu.dot_dimension_numbers<[1], [0], [0], [1], [0, 0, 1, 1], [], []>} : vector<1x36xbf16>, vector<36x120xbf16>, vector<1x120xf32> -> vector<1x120xf32>
    %181 = arith.addf %176, %180 : vector<1x120xf32>
    %182 = vector.extract_strided_slice %135 {offsets = [9, 0], sizes = [1, 36], strides = [1, 1]} : vector<16x36xbf16> to vector<1x36xbf16>
    %c9 = arith.constant 9 : index
    %c0_82 = arith.constant 0 : index
    %c0_83 = arith.constant 0 : index
    %183 = vector.load %arg8[%c9, %c0_82, %c0_83] : memref<16x36x120xbf16, #tpu.memory_space<vmem>>, vector<1x36x120xbf16>
    %184 = vector.shape_cast %183 : vector<1x36x120xbf16> to vector<36x120xbf16>
    %cst_84 = arith.constant dense<0.000000e+00> : vector<1x120xf32>
    %185 = tpu.matmul %182, %184, %cst_84 {dimension_numbers = #tpu.dot_dimension_numbers<[1], [0], [0], [1], [0, 0, 1, 1], [], []>} : vector<1x36xbf16>, vector<36x120xbf16>, vector<1x120xf32> -> vector<1x120xf32>
    %186 = arith.addf %181, %185 : vector<1x120xf32>
    %187 = vector.extract_strided_slice %135 {offsets = [10, 0], sizes = [1, 36], strides = [1, 1]} : vector<16x36xbf16> to vector<1x36xbf16>
    %c10 = arith.constant 10 : index
    %c0_85 = arith.constant 0 : index
    %c0_86 = arith.constant 0 : index
    %188 = vector.load %arg8[%c10, %c0_85, %c0_86] : memref<16x36x120xbf16, #tpu.memory_space<vmem>>, vector<1x36x120xbf16>
    %189 = vector.shape_cast %188 : vector<1x36x120xbf16> to vector<36x120xbf16>
    %cst_87 = arith.constant dense<0.000000e+00> : vector<1x120xf32>
    %190 = tpu.matmul %187, %189, %cst_87 {dimension_numbers = #tpu.dot_dimension_numbers<[1], [0], [0], [1], [0, 0, 1, 1], [], []>} : vector<1x36xbf16>, vector<36x120xbf16>, vector<1x120xf32> -> vector<1x120xf32>
    %191 = arith.addf %186, %190 : vector<1x120xf32>
    %192 = vector.extract_strided_slice %135 {offsets = [11, 0], sizes = [1, 36], strides = [1, 1]} : vector<16x36xbf16> to vector<1x36xbf16>
    %c11 = arith.constant 11 : index
    %c0_88 = arith.constant 0 : index
    %c0_89 = arith.constant 0 : index
    %193 = vector.load %arg8[%c11, %c0_88, %c0_89] : memref<16x36x120xbf16, #tpu.memory_space<vmem>>, vector<1x36x120xbf16>
    %194 = vector.shape_cast %193 : vector<1x36x120xbf16> to vector<36x120xbf16>
    %cst_90 = arith.constant dense<0.000000e+00> : vector<1x120xf32>
    %195 = tpu.matmul %192, %194, %cst_90 {dimension_numbers = #tpu.dot_dimension_numbers<[1], [0], [0], [1], [0, 0, 1, 1], [], []>} : vector<1x36xbf16>, vector<36x120xbf16>, vector<1x120xf32> -> vector<1x120xf32>
    %196 = arith.addf %191, %195 : vector<1x120xf32>
    %197 = vector.extract_strided_slice %135 {offsets = [12, 0], sizes = [1, 36], strides = [1, 1]} : vector<16x36xbf16> to vector<1x36xbf16>
    %c12 = arith.constant 12 : index
    %c0_91 = arith.constant 0 : index
    %c0_92 = arith.constant 0 : index
    %198 = vector.load %arg8[%c12, %c0_91, %c0_92] : memref<16x36x120xbf16, #tpu.memory_space<vmem>>, vector<1x36x120xbf16>
    %199 = vector.shape_cast %198 : vector<1x36x120xbf16> to vector<36x120xbf16>
    %cst_93 = arith.constant dense<0.000000e+00> : vector<1x120xf32>
    %200 = tpu.matmul %197, %199, %cst_93 {dimension_numbers = #tpu.dot_dimension_numbers<[1], [0], [0], [1], [0, 0, 1, 1], [], []>} : vector<1x36xbf16>, vector<36x120xbf16>, vector<1x120xf32> -> vector<1x120xf32>
    %201 = arith.addf %196, %200 : vector<1x120xf32>
    %202 = vector.extract_strided_slice %135 {offsets = [13, 0], sizes = [1, 36], strides = [1, 1]} : vector<16x36xbf16> to vector<1x36xbf16>
    %c13 = arith.constant 13 : index
    %c0_94 = arith.constant 0 : index
    %c0_95 = arith.constant 0 : index
    %203 = vector.load %arg8[%c13, %c0_94, %c0_95] : memref<16x36x120xbf16, #tpu.memory_space<vmem>>, vector<1x36x120xbf16>
    %204 = vector.shape_cast %203 : vector<1x36x120xbf16> to vector<36x120xbf16>
    %cst_96 = arith.constant dense<0.000000e+00> : vector<1x120xf32>
    %205 = tpu.matmul %202, %204, %cst_96 {dimension_numbers = #tpu.dot_dimension_numbers<[1], [0], [0], [1], [0, 0, 1, 1], [], []>} : vector<1x36xbf16>, vector<36x120xbf16>, vector<1x120xf32> -> vector<1x120xf32>
    %206 = arith.addf %201, %205 : vector<1x120xf32>
    %207 = vector.extract_strided_slice %135 {offsets = [14, 0], sizes = [1, 36], strides = [1, 1]} : vector<16x36xbf16> to vector<1x36xbf16>
    %c14 = arith.constant 14 : index
    %c0_97 = arith.constant 0 : index
    %c0_98 = arith.constant 0 : index
    %208 = vector.load %arg8[%c14, %c0_97, %c0_98] : memref<16x36x120xbf16, #tpu.memory_space<vmem>>, vector<1x36x120xbf16>
    %209 = vector.shape_cast %208 : vector<1x36x120xbf16> to vector<36x120xbf16>
    %cst_99 = arith.constant dense<0.000000e+00> : vector<1x120xf32>
    %210 = tpu.matmul %207, %209, %cst_99 {dimension_numbers = #tpu.dot_dimension_numbers<[1], [0], [0], [1], [0, 0, 1, 1], [], []>} : vector<1x36xbf16>, vector<36x120xbf16>, vector<1x120xf32> -> vector<1x120xf32>
    %211 = arith.addf %206, %210 : vector<1x120xf32>
    %212 = vector.extract_strided_slice %135 {offsets = [15, 0], sizes = [1, 36], strides = [1, 1]} : vector<16x36xbf16> to vector<1x36xbf16>
    %c15 = arith.constant 15 : index
    %c0_100 = arith.constant 0 : index
    %c0_101 = arith.constant 0 : index
    %213 = vector.load %arg8[%c15, %c0_100, %c0_101] : memref<16x36x120xbf16, #tpu.memory_space<vmem>>, vector<1x36x120xbf16>
    %214 = vector.shape_cast %213 : vector<1x36x120xbf16> to vector<36x120xbf16>
    %cst_102 = arith.constant dense<0.000000e+00> : vector<1x120xf32>
    %215 = tpu.matmul %212, %214, %cst_102 {dimension_numbers = #tpu.dot_dimension_numbers<[1], [0], [0], [1], [0, 0, 1, 1], [], []>} : vector<1x36xbf16>, vector<36x120xbf16>, vector<1x120xf32> -> vector<1x120xf32>
    %216 = arith.addf %211, %215 : vector<1x120xf32>
    %cst_103 = arith.constant 0.000000e+00 : f32
    %217 = vector.broadcast %cst_103 : f32 to vector<1x120xf32>
    %218 = arith.maximumf %216, %217 : vector<1x120xf32>
    %219 = arith.truncf %218 : vector<1x120xf32> to vector<1x120xbf16>
    %c0_104 = arith.constant 0 : index
    %c0_105 = arith.constant 0 : index
    %220 = vector.load %arg9[%c0_104, %c0_105] : memref<120x128xbf16, #tpu.memory_space<vmem>>, vector<120x128xbf16>
    %cst_106 = arith.constant dense<0.000000e+00> : vector<1x128xf32>
    %221 = tpu.matmul %219, %220, %cst_106 {dimension_numbers = #tpu.dot_dimension_numbers<[1], [0], [0], [1], [0, 0, 1, 1], [], []>} : vector<1x120xbf16>, vector<120x128xbf16>, vector<1x128xf32> -> vector<1x128xf32>
    %222 = vector.shape_cast %221 : vector<1x128xf32> to vector<1x1x128xf32>
    %c0_107 = arith.constant 0 : index
    %c0_108 = arith.constant 0 : index
    %c0_109 = arith.constant 0 : index
    %223 = vector.load %arg10[%c0_107, %c0_108, %c0_109] : memref<1x1x128xf32, #tpu.memory_space<vmem>>, vector<1x1x128xf32>
    tpu.vector_store %arg10[%c0_107, %c0_108, %c0_109], %222 {strides = array<i32>} : memref<1x1x128xf32, #tpu.memory_space<vmem>>, vector<1x1x128xf32>,
    return
  }
  func.func @transform_0(%arg0: i32) -> (i32, i32, i32) {
    %c0_i32 = arith.constant 0 : i32
    %c0_i32_0 = arith.constant 0 : i32
    %c0_i32_1 = arith.constant 0 : i32
    return %arg0, %c0_i32, %c0_i32_0 : i32, i32, i32
  }
  func.func @transform_1(%arg0: i32) -> (i32, i32) {
    %c0_i32 = arith.constant 0 : i32
    %c0_i32_0 = arith.constant 0 : i32
    %c0_i32_1 = arith.constant 0 : i32
    return %c0_i32, %c0_i32_0 : i32, i32
  }
  func.func @transform_2(%arg0: i32) -> (i32, i32) {
    %c0_i32 = arith.constant 0 : i32
    %c0_i32_0 = arith.constant 0 : i32
    %c0_i32_1 = arith.constant 0 : i32
    return %c0_i32, %c0_i32_0 : i32, i32
  }
  func.func @transform_3(%arg0: i32) -> (i32, i32, i32) {
    %c0_i32 = arith.constant 0 : i32
    %c0_i32_0 = arith.constant 0 : i32
    %c0_i32_1 = arith.constant 0 : i32
    %c0_i32_2 = arith.constant 0 : i32
    return %c0_i32, %c0_i32_0, %c0_i32_1 : i32, i32, i32
  }
  func.func @transform_4(%arg0: i32) -> (i32, i32) {
    %c0_i32 = arith.constant 0 : i32
    %c0_i32_0 = arith.constant 0 : i32
    %c0_i32_1 = arith.constant 0 : i32
    return %c0_i32, %c0_i32_0 : i32, i32
  }
  func.func @transform_5(%arg0: i32) -> (i32, i32) {
    %c0_i32 = arith.constant 0 : i32
    %c0_i32_0 = arith.constant 0 : i32
    %c0_i32_1 = arith.constant 0 : i32
    return %c0_i32, %c0_i32_0 : i32, i32
  }
  func.func @transform_6(%arg0: i32) -> (i32, i32) {
    %c0_i32 = arith.constant 0 : i32
    %c0_i32_0 = arith.constant 0 : i32
    %c0_i32_1 = arith.constant 0 : i32
    return %c0_i32, %c0_i32_0 : i32, i32
  }
  func.func @transform_7(%arg0: i32) -> (i32, i32, i32) {
    %c0_i32 = arith.constant 0 : i32
    %c0_i32_0 = arith.constant 0 : i32
    %c0_i32_1 = arith.constant 0 : i32
    %c0_i32_2 = arith.constant 0 : i32
    return %c0_i32, %c0_i32_0, %c0_i32_1 : i32, i32, i32
  }
  func.func @transform_8(%arg0: i32) -> (i32, i32) {
    %c0_i32 = arith.constant 0 : i32
    %c0_i32_0 = arith.constant 0 : i32
    %c0_i32_1 = arith.constant 0 : i32
    return %c0_i32, %c0_i32_0 : i32, i32
  }
  func.func @transform_9(%arg0: i32) -> (i32, i32, i32) {
    %c0_i32 = arith.constant 0 : i32
    %c0_i32_0 = arith.constant 0 : i32
    %c0_i32_1 = arith.constant 0 : i32
    return %arg0, %c0_i32, %c0_i32_0 : i32, i32, i32
  }
}

</mosaic_0001>

<bundles_post_ra>
// kernel: mnist_forward.1
= control target key start
LH: loop header
LB: loop body
LE: loop exit
PB: predicated region body
PF: predicated region fallthrough
CT: control target
= control target key end

     0   :  { %14 = vsyncpa [#allocation3], 0  ;;  %s6687_s0 = inlined_call_operand.vmem [shape: f32[2,1,1024], index: 0, kind: input, shape index: {}]   ;;  %s6688_s1 = inlined_call_operand.hbm [shape: f32[6,9], index: 1, kind: input, shape index: {}]   ;;  %s6689_s2 = inlined_call_operand.vmem [shape: f32[6,1], index: 2, kind: input, shape index: {}]   ;;  %s6690_s3 = inlined_call_operand.vmem [shape: bf16[9,16,6], index: 3, kind: input, shape index: {}]   ;;  %s6691_s4 = inlined_call_operand.vmem [shape: f32[16,1], index: 4, kind: input, shape index: {}]   ;;  %s6692_s5 = inlined_call_operand.vmem [shape: bf16[925,225], index: 5, kind: input, shape index: {}]   ;;  %s6693_s6 = inlined_call_operand.vmem [shape: bf16[177,36], index: 6, kind: input, shape index: {}]   ;;  %s6694_s7 = inlined_call_operand.vmem [shape: bf16[16,36,120], index: 7, kind: input, shape index: {}]   ;;  %s6695_s8 = inlined_call_operand.hbm [shape: bf16[120,128], index: 8, kind: input, shape index: {}]   ;;  %s6696_s9 = inlined_call_operand.hbm [shape: f32[2,1,128], index: 9, kind: output, shape index: {}]  }
   0x1   :  { %15 = vsyncpa [#allocation6], 0 }
   0x2   :  { %16 = vsyncpa [#allocation4], 0 }
   0x3   :  { %18 = vsyncpa [#allocation4 + $0x1], 0  ;;  %s5224_s30 = smov 0   ;;  %s5226_s10 = smov 0  }
   0x4   :  { %s5228_s11 = smov 0   ;;  %s5230_s12 = smov 0  }
   0x5 LB: > { %s5245_s13 = sadd.s32 4294967295, %s5142_s12   ;;  %s4033_s14 = sadd.s32 4294967294, %s5142_s12   ;;  %s5142_s12 = sphi %s5230_s12, %s6717_s12   ;;  %s5138_s11 = sphi %s5228_s11, %s6716_s11   ;;  %s5134_s10 = sphi %s5226_s10, %s6715_s10   ;;  %s5130_s30 = sphi %s5224_s30, %s6714_s30  }
   0x6   : > { %s5249_s15 = sadd.s32 1, %s5142_s12   ;;  %s225_s16 = sadd.s32 1, %s5138_s11 }
   0x7   : > { %s222_s17 = ssub.s32 %s5142_s12, %s5249_s15  ;;  %p235_p0 = scmp.ne.s32.totalorder %s5138_s11, %s5134_s10 }
   0x8   : > { %p223_p1 = scmp.eq.s32.totalorder %s222_s17, 0  ;;  %p236_p2 = scmp.eq.s32.totalorder %s5245_s13, 1 }
   0x9   : > { %p241_p3 = scmp.ne.s32.totalorder %s5134_s10, %s5130_s30  ;;  %p242_p4 = scmp.eq.s32.totalorder %s4033_s14, 1 }
   0xa   : > { %s5260_s18 = scalar_select %p223_p1, %s5138_s11, %s225_s16  }
   0xb   : > { %p5262_p5 = por %p236_p2, %p235_p0  ;;  %p5266_p6 = por %p242_p4, %p241_p3 }
   0xc   : > { %p4034_p7 = scmp.ge.s32.totalorder %s5142_s12, 1  ;;  %p249_p8 = scmp.lt.s32.totalorder %s5142_s12, 3 }
   0xd   : > { %s6702_s19 = scalar_select %p5262_p5, 1, 0 }
   0xe   : > { %s6703_s20 = scalar_select %p5266_p6, 1, 0 }
   0xf   : > { %p6697_p9 = scmp.eq.s32.totalorder %s5245_s13, 0  ;;  %p5273_p10 = pnand %p4034_p7, %p249_p8 }
  0x10   : > { %s5144_s22 = smov [#allocation2]   ;;  %s5145_s24 = smov [#allocation5]  }
  0x11   : > { %s6704_s21 = scalar_select %p5273_p10, 1, 0 }
  0x12   : > { %s262_s23 = sshll.u32 %s5144_s22, 4  ;;  %p4629_p11 = pneg %p5273_p10  ;;  %s263_s23 = int_to_ptr.vmem [resolvable:$true] %s262_s23 }
  0x13   : > { %s290_s25 = sshll.u32 %s5145_s24, 4  ;;  %s5033_s27 = scalar_lea.vmem %s263_s23, 128  ;;  %s291_s25 = int_to_ptr.vmem [resolvable:$true] %s290_s25 }
  0x14   : > { %p5281_p12 = pnand %p6697_p9, %p4629_p11  ;;  %p5034_p0 = scmp.ne.s32.totalorder %s263_s23, %s5033_s27 }
  0x15   : > { %p5041_p3 = scmp.lt.s32.totalorder %s263_s23, %s263_s23  ;;  %p5042_p4 = scmp.lt.s32.totalorder %s5033_s27, %s5033_s27 }
  0x16   : > { %p5024_p13 = pneg %p5281_p12 }
  0x17   : > { %p5043_p7 = por %p5042_p4, %p5041_p3 }
  0x18   : > { %p5036_p1 = pnand %p5034_p0, %p5024_p13 }
  0x1a   : > { %p5037_p2 = pneg %p5036_p1 }
  0x1c   : > { %p5044_p8 = pnand %p5043_p7, %p5037_p2 }
  0x1e   : > { %5047 = shalt.err (!%p5044_p8)
}
  0x1f   : > { %4632 = dma.hbm_to_vmem [thread:$0]  (!%p5281_p12), %s6688_s1, 128, %s263_s23, [#allocation3]  }
  0x20   : > { %s5059_s14 = scalar_lea.vmem %s291_s25, 960  ;;  %p5067_p0 = scmp.lt.s32.totalorder %s291_s25, %s291_s25 }
  0x21   : > { %p5060_p11 = scmp.ne.s32.totalorder %s291_s25, %s5059_s14  ;;  %p5068_p1 = scmp.lt.s32.totalorder %s5059_s14, %s5059_s14 }
  0x23   : > { %p5062_p9 = pnand %p5060_p11, %p5024_p13  ;;  %p5069_p5 = por %p5068_p1, %p5067_p0 }
  0x25   : > { %p5063_p6 = pneg %p5062_p9 }
  0x27   : > { %p5070_p10 = pnand %p5069_p5, %p5063_p6 }
  0x29   : > { %5073 = shalt.err (!%p5070_p10)
}
  0x2a   : > { %s5146_s16 = smov 64   ;;  %s5147_s17 = smov 4  }
  0x2b   : > { %4635 = dma.hbm_to_vmem [thread:$0]  (!%p5281_p12), %s6695_s8, 960, %s291_s25, [#allocation6], %s5146_s16, %s5146_s16, %s5147_s17  }
  0x2c   : > { %p6706_p2 = scmp.ne.s32.totalorder %s6704_s21, 0 }
  0x2d   : > { %p6707_p3 = scmp.eq.s32.totalorder (!%p6706_p2), %s5245_s13, 0 }
  0x2e   : > { %313 = sbr.rel (%p6706_p2) target bundleno = 2299 (0x8fb), region = 56 }
  0x33   : > { %5117 = dma.done.wait (%p6707_p3), [#allocation3], 128   ;;  %p6708_p9 = pmov %p6707_p3 }
  0x34   : > { %p6709_p5 = pmov %p6707_p3 }
  0x35   : > { %5119 = vsyncadd (%p6708_p9), [#allocation3], 4294967168 }
  0x36   : > { %5121 = dma.done.wait (%p6709_p5), [#allocation6], 960   ;;  %p6710_p6 = pmov %p6707_p3 }
  0x37   : > { %v5148_v0 = vmov 1   ;;  %v5149_v1 = vmov 3   ;;  %p351_p10 = scmp.lt.s32.totalorder %s5245_s13, 1  ;;  %v364_v2 = vlaneseq  ;;  %v357_v4 = vld [vmem:[#allocation2] sm:$0x3f]  ;;  %v5150_v12 = vmov 2  }
  0x38   : > { %5123 = vsyncadd (%p6710_p6), [#allocation6], 4294966336  ;;  %4706 = vset.pattern.permute.xlu0 %v5148_v0  ;;  %4708 = vset.pattern.permute.xlu1 %v5149_v1  ;;  %v5151_v13 = vmov 4   ;;  %v5152_v14 = vmov 5   ;;  %v5153_v15 = vmov 6   ;;  %v5154_v16 = vmov 7  }
  0x39   : > { %s352_s21 = scalar_select %p351_p10, %s5245_s13, 1  ;;  %v365_v3 = vshrl.u32 %v364_v2, 7  ;;  %421 = vperm.xlu0 %4706, %v357_v4   ;;  %541 = vperm.xlu1 %4708, %v357_v4   ;;  %v5155_v17 = vmov 0   ;;  %v900_v18 = vld [vmem:[%s6689_s2] sm:$0x3f]  ;;  %v5156_v19 = vmov 8  }
  0x3a   : > { %s5157_s14 = smov 127   ;;  %s6700_s16 = smov 126   ;;  %vm456_vm0 = vcmask 1039360   ;;  %vm516_vm1 = vcmask 1031168   ;;  %vm576_vm2 = vcmask 785408   ;;  %vm636_vm3 = vcmask 777216  }
  0x3b   : > { %s4041_s23 = sshll.u32 %s352_s21, 3  ;;  %v390_v6 = vsub.s32 6, %v365_v3  ;;  %v386_v7 = vsub.s32 5, %v365_v3  ;;  %v394_v8 = vsub.s32 7, %v365_v3  ;;  %v378_v20 = vsub.s32 3, %v365_v3  ;;  %s5159_s17 = smov 96  }
  0x3c   : > { %s354_s27 = scalar_lea.vmem %s6687_s0, %s4041_s23  ;;  %v370_v21 = vsub.s32 1, %v365_v3  ;;  %v374_v24 = vsub.s32 2, %v365_v3  ;;  %v366_v25 = vsub.s32 0, %v365_v3  ;;  %v382_v27 = vsub.s32 4, %v365_v3  ;;  %s5160_s22 = smov 95  }
  0x3d   : > { %v356_v5 = vld [vmem:[%s354_s27] sm:$0xff]  ;;  %4707 = vset.pattern.permute.xlu0 %v5150_v12  ;;  %4709 = vset.pattern.permute.xlu1 %v5151_v13  ;;  %s5161_s24 = smov 94   ;;  %s5162_s21 = smov 64   ;;  %vm696_vm4 = vcmask 769024   ;;  %vm756_vm5 = vcmask 523264   ;;  %vm816_vm6 = vcmask 515072  }
  0x3e   : > { %v5318_v9 = vrot.slane %v356_v5, %v390_v6  ;;  %v5320_v10 = vrot.slane %v356_v5, %v386_v7  ;;  %v5322_v11 = vrot.slane %v356_v5, %v394_v8  ;;  %481 = vperm.xlu0 %4707, %v357_v4   ;;  %601 = vperm.xlu1 %4709, %v357_v4   ;;  %s5163_s23 = smov 63   ;;  %s5164_s25 = smov 62   ;;  %vm876_vm7 = vcmask 506880  }
  0x3f   : > { %v5329_v22 = vrot.slane %v356_v5, %v378_v20  ;;  %v5331_v23 = vrot.slane %v356_v5, %v370_v21  ;;  %v5339_v30 = vrot.slane %v356_v5, %v374_v24  ;;  %v5341_v31 = vrot.slane %v356_v5, %v366_v25  ;;  %s5169_s26 = smov 98   ;;  %s5170_s27 = smov 97  }
  0x40   : > { %v5351_v35 = vrot.slane %v356_v5, %v382_v27  ;;  %vm1722_vm8 = vcmask 1045504   ;;  %vm1723_vm9 = vcmask 1046528   ;;  %vm1718_vm10 = vcmask 236544   ;;  %p6712_p13 = scmp.ne.s32.totalorder %s6702_s19, 0 }
  0x41   : > { %vm1920_vm11 = vcmask 1042432   ;;  %vm1916_vm12 = vcmask 48128   ;;  %vm2109_vm13 = vcmask 924672   ;;  %vm2249_vm14 = vcmask 908288  }
  0x42   : > { %4710 = vset.pattern.permute.xlu1 %v5152_v14  ;;  %4711 = vset.pattern.permute.xlu0 %v5153_v15  ;;  %vm2179_vm15 = vcmask 916480  }
  0x43   : > { %661 = vperm.xlu1 %4710, %v357_v4   ;;  %721 = vperm.xlu0 %4711, %v357_v4  }
  0x47   : > { %4712 = vset.pattern.permute.xlu1 %v5154_v16  ;;  %4714 = vset.pattern.permute.xlu0 %v5155_v17 }
  0x48   : > { %781 = vperm.xlu1 %4712, %v357_v4   ;;  %360 = vperm.xlu0 %4714, %v357_v4  }
  0x4c   : > { %4713 = vset.pattern.permute.xlu1 %v5156_v19  ;;  %903 = vperm.xlu0 %4714, %v900_v18  }
  0x4d   : > { %841 = vperm.xlu1 %4713, %v357_v4  }
  0x51   : > { %4750 = vset.pattern.permute.xlu1 %v5155_v17 }
  0xb4   : > { %v5333_v26 = vpop.permute.xlu0 %421  ;;  %v5365_v40 = vpop.permute.xlu1 %541 }
  0xb5   : > { %v427_v28 = vmul.f32 %v5333_v26, %v5329_v22  ;;  %v425_v29 = vmul.f32 %v5333_v26, %v5331_v23  ;;  %v426_v32 = vmul.f32 %v5333_v26, %v5339_v30  ;;  %v424_v33 = vmul.f32 %v5333_v26, %v5341_v31 }
  0xb6   : > { %v428_v37 = vmul.f32 %v5333_v26, %v5351_v35  ;;  %v545_v43 = vmul.f32 %v5365_v40, %v5331_v23  ;;  %v547_v46 = vmul.f32 %v5365_v40, %v5329_v22  ;;  %v546_v54 = vmul.f32 %v5365_v40, %v5339_v30 }
  0xb7   : > { %446 = vrot.lane.b32.xlu0 %v427_v28, %s5157_s14  ;;  %442 = vrot.lane.b32.xlu1 %v425_v29, %s5157_s14  ;;  %v544_v55 = vmul.f32 %v5365_v40, %v5341_v31  ;;  %v548_v58 = vmul.f32 %v5365_v40, %v5351_v35  ;;  %v430_v27 = vmul.f32 %v5333_v26, %v5318_v9 }
  0xb9   : > { %v5349_v34 = vpop.permute.xlu0 %481  ;;  %v5417_v56 = vpop.permute.xlu1 %601 }
  0xba   : > { %v486_v36 = vmul.f32 %v5349_v34, %v5339_v30  ;;  %v485_v38 = vmul.f32 %v5349_v34, %v5331_v23  ;;  %v488_v39 = vmul.f32 %v5349_v34, %v5351_v35  ;;  %v487_v44 = vmul.f32 %v5349_v34, %v5329_v22 }
  0xbb   : > { %444 = vrot.lane.b32.xlu1 %v426_v32, %s5157_s14  ;;  %440 = vrot.lane.b32.xlu0 %v424_v33, %s5157_s14  ;;  %v484_v53 = vmul.f32 %v5349_v34, %v5341_v31  ;;  %v606_v57 = vmul.f32 %v5417_v56, %v5339_v30  ;;  %v605_v59 = vmul.f32 %v5417_v56, %v5331_v23 }
  0xbc   : > { %v608_v60 = vmul.f32 %v5417_v56, %v5351_v35  ;;  %v607_v63 = vmul.f32 %v5417_v56, %v5329_v22  ;;  %v604_v1 = vmul.f32 %v5417_v56, %v5341_v31  ;;  %v490_v29 = vmul.f32 %v5349_v34, %v5318_v9 }
  0xbd   : > { %v550_v32 = vmul.f32 %v5365_v40, %v5318_v9  ;;  %v489_v33 = vmul.f32 %v5349_v34, %v5320_v10 }
  0xbe   : > { %v5367_v41 = vpop.permute.xlu0 %721  ;;  %v5431_v61 = vpop.permute.xlu1 %661 }
  0xbf   : > { %448 = vrot.lane.b32.xlu1 %v428_v37, %s5157_s14  ;;  %504 = vrot.lane.b32.xlu0 %v486_v36, %s6700_s16  ;;  %v5371_v42 = vmul.f32 %v5367_v41, %v5322_v11  ;;  %v665_v62 = vmul.f32 %v5431_v61, %v5331_v23  ;;  %v667_v0 = vmul.f32 %v5431_v61, %v5329_v22 }
  0xc0   : > { %v666_v2 = vmul.f32 %v5431_v61, %v5339_v30  ;;  %v664_v3 = vmul.f32 %v5431_v61, %v5341_v31  ;;  %v726_v4 = vmul.f32 %v5367_v41, %v5339_v30  ;;  %v668_v5 = vmul.f32 %v5431_v61, %v5351_v35 }
  0xc1   : > { %v725_v6 = vmul.f32 %v5367_v41, %v5331_v23  ;;  %v728_v7 = vmul.f32 %v5367_v41, %v5351_v35  ;;  %v727_v13 = vmul.f32 %v5367_v41, %v5329_v22  ;;  %v724_v16 = vmul.f32 %v5367_v41, %v5341_v31 }
  0xc2   : > { %v549_v36 = vmul.f32 %v5365_v40, %v5320_v10  ;;  %v670_v37 = vmul.f32 %v5431_v61, %v5318_v9 }
  0xc3   : > { %502 = vrot.lane.b32.xlu1 %v485_v38, %s6700_s16  ;;  %508 = vrot.lane.b32.xlu0 %v488_v39, %s6700_s16  ;;  %v5379_v45 = vpop.permute.xlu0 %360  ;;  %v5463_v8 = vpop.permute.xlu1 %781  ;;  %v609_v38 = vmul.f32 %v5417_v56, %v5320_v10  ;;  %v730_v39 = vmul.f32 %v5367_v41, %v5318_v9 }
  0xc4   : > { %v5385_v47 = vmul.f32 %v5341_v31, %v5379_v45  ;;  %v5389_v48 = vmul.f32 %v5329_v22, %v5379_v45  ;;  %v5395_v49 = vmul.f32 %v5351_v35, %v5379_v45  ;;  %v5399_v50 = vmul.f32 %v5320_v10, %v5379_v45 }
  0xc5   : > { %v5403_v51 = vmul.f32 %v5318_v9, %v5379_v45  ;;  %v5407_v52 = vmul.f32 %v5322_v11, %v5379_v45  ;;  %v785_v12 = vmul.f32 %v5463_v8, %v5331_v23  ;;  %v787_v14 = vmul.f32 %v5463_v8, %v5329_v22 }
  0xc6   : > { %v786_v18 = vmul.f32 %v5463_v8, %v5339_v30  ;;  %v788_v21 = vmul.f32 %v5463_v8, %v5351_v35  ;;  %v784_v25 = vmul.f32 %v5463_v8, %v5341_v31 }
  0xc7   : > { %506 = vrot.lane.b32.xlu1 %v487_v44, %s6700_s16  ;;  %562 = vrot.lane.b32.xlu0 %v545_v43, %s5159_s17  ;;  %v669_v43 = vmul.f32 %v5431_v61, %v5320_v10  ;;  %v790_v44 = vmul.f32 %v5463_v8, %v5318_v9 }
  0xc8   : > { %v5475_v15 = vpop.permute.xlu1 %841 }
  0xc9   : > { %v845_v19 = vmul.f32 %v5475_v15, %v5331_v23  ;;  %v847_v20 = vmul.f32 %v5475_v15, %v5329_v22  ;;  %v844_v24 = vmul.f32 %v5475_v15, %v5341_v31  ;;  %v846_v22 = vmul.f32 %v5475_v15, %v5339_v30 }
  0xca   : > { %v848_v28 = vmul.f32 %v5475_v15, %v5351_v35  ;;  %v429_v31 = vmul.f32 %v5333_v26, %v5320_v10  ;;  %v610_v35 = vmul.f32 %v5417_v56, %v5318_v9 }
  0xcb   : > { %500 = vrot.lane.b32.xlu1 %v484_v53, %s6700_s16  ;;  %566 = vrot.lane.b32.xlu0 %v547_v46, %s5159_s17  ;;  %v729_v46 = vmul.f32 %v5367_v41, %v5320_v10  ;;  %v850_v53 = vmul.f32 %v5475_v15, %v5318_v9  ;;  %v849_v41 = vmul.f32 %v5475_v15, %v5320_v10 }
  0xcc   : > { %v611_v9 = vmul.f32 %v5417_v56, %v5322_v11  ;;  %v551_v56 = vmul.f32 %v5365_v40, %v5322_v11 }
  0xcf   : > { %564 = vrot.lane.b32.xlu1 %v546_v54, %s5159_s17  ;;  %560 = vrot.lane.b32.xlu0 %v544_v55, %s5159_s17  ;;  %v789_v54 = vmul.f32 %v5463_v8, %v5320_v10  ;;  %v491_v55 = vmul.f32 %v5349_v34, %v5322_v11  ;;  %v431_v34 = vmul.f32 %v5333_v26, %v5322_v11 }
  0xd3   : > { %568 = vrot.lane.b32.xlu1 %v548_v58, %s5159_s17  ;;  %624 = vrot.lane.b32.xlu0 %v606_v57, %s5160_s22  ;;  %v5553_v57 = vpop.permute.xlu0 %903 }
  0xd7   : > { %622 = vrot.lane.b32.xlu1 %v605_v59, %s5160_s22  ;;  %628 = vrot.lane.b32.xlu0 %v608_v60, %s5160_s22 }
  0xdb   : > { %626 = vrot.lane.b32.xlu1 %v607_v63, %s5160_s22  ;;  %682 = vrot.lane.b32.xlu0 %v665_v62, %s5161_s24  ;;  %v851_v62 = vmul.f32 %v5475_v15, %v5322_v11 }
  0xdf   : > { %620 = vrot.lane.b32.xlu1 %v604_v1, %s5160_s22  ;;  %686 = vrot.lane.b32.xlu0 %v667_v0, %s5161_s24  ;;  %v671_v1 = vmul.f32 %v5431_v61, %v5322_v11 }
  0xe3   : > { %684 = vrot.lane.b32.xlu1 %v666_v2, %s5161_s24  ;;  %680 = vrot.lane.b32.xlu0 %v664_v3, %s5161_s24  ;;  %v791_v3 = vmul.f32 %v5463_v8, %v5322_v11 }
  0xe7   : > { %688 = vrot.lane.b32.xlu1 %v668_v5, %s5161_s24  ;;  %744 = vrot.lane.b32.xlu0 %v726_v4, %s5162_s21 }
  0xeb   : > { %742 = vrot.lane.b32.xlu1 %v725_v6, %s5162_s21  ;;  %748 = vrot.lane.b32.xlu0 %v728_v7, %s5162_s21 }
  0xef   : > { %746 = vrot.lane.b32.xlu1 %v727_v13, %s5162_s21  ;;  %802 = vrot.lane.b32.xlu0 %v785_v12, %s5163_s23 }
  0xf3   : > { %740 = vrot.lane.b32.xlu1 %v724_v16, %s5162_s21  ;;  %806 = vrot.lane.b32.xlu0 %v787_v14, %s5163_s23 }
  0xf7   : > { %804 = vrot.lane.b32.xlu1 %v786_v18, %s5163_s23  ;;  %862 = vrot.lane.b32.xlu0 %v845_v19, %s5164_s25 }
  0xfb   : > { %808 = vrot.lane.b32.xlu1 %v788_v21, %s5163_s23  ;;  %866 = vrot.lane.b32.xlu0 %v847_v20, %s5164_s25 }
  0xff   : > { %800 = vrot.lane.b32.xlu1 %v784_v25, %s5163_s23  ;;  %860 = vrot.lane.b32.xlu0 %v844_v24, %s5164_s25 }
 0x103   : > { %864 = vrot.lane.b32.xlu1 %v846_v22, %s5164_s25  ;;  %452 = vrot.lane.b32.xlu0 %v430_v27, %s5157_s14 }
 0x107   : > { %868 = vrot.lane.b32.xlu1 %v848_v28, %s5164_s25  ;;  %512 = vrot.lane.b32.xlu0 %v490_v29, %s6700_s16 }
 0x10b   : > { %450 = vrot.lane.b32.xlu1 %v429_v31, %s5157_s14  ;;  %572 = vrot.lane.b32.xlu0 %v550_v32, %s5159_s17 }
 0x10f   : > { %510 = vrot.lane.b32.xlu1 %v489_v33, %s6700_s16  ;;  %632 = vrot.lane.b32.xlu0 %v610_v35, %s5160_s22 }
 0x113   : > { %570 = vrot.lane.b32.xlu1 %v549_v36, %s5159_s17  ;;  %692 = vrot.lane.b32.xlu0 %v670_v37, %s5161_s24  ;;  %v406_v36 = vmul.f32 %v5339_v30, %v5379_v45  ;;  %v405_v37 = vmul.f32 %v5331_v23, %v5379_v45 }
 0x117   : > { %630 = vrot.lane.b32.xlu1 %v609_v38, %s5160_s22  ;;  %752 = vrot.lane.b32.xlu0 %v730_v39, %s5162_s21 }
 0x11b   : > { %690 = vrot.lane.b32.xlu1 %v669_v43, %s5161_s24  ;;  %812 = vrot.lane.b32.xlu0 %v790_v44, %s5163_s23 }
 0x11f   : > { %750 = vrot.lane.b32.xlu1 %v729_v46, %s5162_s21  ;;  %872 = vrot.lane.b32.xlu0 %v850_v53, %s5164_s25 }
 0x123   : > { %810 = vrot.lane.b32.xlu1 %v789_v54, %s5163_s23  ;;  %514 = vrot.lane.b32.xlu0 %v491_v55, %s6700_s16  ;;  %s6711_s16 = smov 126  }
 0x127   : > { %870 = vrot.lane.b32.xlu1 %v849_v41, %s5164_s25  ;;  %634 = vrot.lane.b32.xlu0 %v611_v9, %s5160_s22 }
 0x129   : > { %v5561_v58 = vpop.permute.xlu0 %446  ;;  %v443_v59 = vpop.permute.xlu1 %442 }
 0x12b   : > { %454 = vrot.lane.b32.xlu1 %v431_v34, %s5157_s14  ;;  %754 = vrot.lane.b32.xlu0 %v5371_v42, %s5162_s21  ;;  %s5166_s21 = smov 113  }
 0x12d   : > { %v445_v10 = vpop.permute.xlu1 %444  ;;  %v441_v60 = vpop.permute.xlu0 %440 }
 0x12e   : > { %v457_v63 = vsel %vm456_vm0, %v441_v60, %v443_v59  ;;  %v458_v32 = vsel %vm456_vm0, %v443_v59, %v445_v10  ;;  %v459_v33 = vsel %vm456_vm0, %v445_v10, %v5561_v58 }
 0x12f   : > { %v472_v0 = vadd.f32 %v457_v63, %v5385_v47  ;;  %574 = vrot.lane.b32.xlu1 %v551_v56, %s5159_s17  ;;  %874 = vrot.lane.b32.xlu0 %v851_v62, %s5164_s25  ;;  %v473_v44 = vadd.f32 %v458_v32, %v405_v37  ;;  %v474_v46 = vadd.f32 %v459_v33, %v406_v36  ;;  %s5168_s25 = smov 111  }
 0x131   : > { %v5576_v26 = vpop.permute.xlu1 %448  ;;  %v505_v42 = vpop.permute.xlu0 %504 }
 0x132   : > { %v460_v30 = vsel %vm456_vm0, %v5561_v58, %v5576_v26 }
 0x133   : > { %694 = vrot.lane.b32.xlu1 %v671_v1, %s5161_s24  ;;  %v475_v58 = vadd.f32 %v460_v30, %v5389_v48 }
 0x135   : > { %v503_v40 = vpop.permute.xlu1 %502  ;;  %v5581_v2 = vpop.permute.xlu0 %508 }
 0x136   : > { %v518_v38 = vsel %vm516_vm1, %v503_v40, %v505_v42 }
 0x137   : > { %814 = vrot.lane.b32.xlu1 %v791_v3, %s5163_s23  ;;  %v533_v9 = vadd.f32 %v518_v38, %v473_v44  ;;  %s5167_s23 = smov 112  }
 0x139   : > { %v507_v47 = vpop.permute.xlu1 %506  ;;  %v563_v4 = vpop.permute.xlu0 %562 }
 0x13a   : > { %v519_v39 = vsel %vm516_vm1, %v505_v42, %v507_v47  ;;  %v520_v10 = vsel %vm516_vm1, %v507_v47, %v5581_v2 }
 0x13b   : > { %v534_v59 = vadd.f32 %v519_v39, %v474_v46 }
 0x13d   : > { %v501_v5 = vpop.permute.xlu1 %500  ;;  %v567_v6 = vpop.permute.xlu0 %566 }
 0x13e   : > { %v517_v35 = vsel %vm516_vm1, %v501_v5, %v503_v40 }
 0x13f   : > { %v532_v53 = vadd.f32 %v517_v35, %v472_v0 }
 0x141   : > { %v565_v7 = vpop.permute.xlu1 %564  ;;  %v561_v12 = vpop.permute.xlu0 %560 }
 0x142   : > { %v577_v43 = vsel %vm576_vm2, %v561_v12, %v563_v4  ;;  %v578_v23 = vsel %vm576_vm2, %v563_v4, %v565_v7  ;;  %v579_v45 = vsel %vm576_vm2, %v565_v7, %v567_v6  ;;  %v535_v7 = vadd.f32 %v520_v10, %v475_v58 }
 0x143   : > { %v592_v34 = vadd.f32 %v577_v43, %v532_v53  ;;  %v593_v63 = vadd.f32 %v578_v23, %v533_v9  ;;  %v594_v0 = vadd.f32 %v579_v45, %v534_v59 }
 0x145   : > { %v5586_v13 = vpop.permute.xlu1 %568  ;;  %v625_v14 = vpop.permute.xlu0 %624 }
 0x146   : > { %v580_v3 = vsel %vm576_vm2, %v567_v6, %v5586_v13 }
 0x147   : > { %v595_v6 = vadd.f32 %v580_v3, %v535_v7 }
 0x149   : > { %v623_v61 = vpop.permute.xlu1 %622  ;;  %v5588_v15 = vpop.permute.xlu0 %628 }
 0x14a   : > { %v638_v60 = vsel %vm636_vm3, %v623_v61, %v625_v14 }
 0x14b   : > { %v653_v12 = vadd.f32 %v638_v60, %v593_v63 }
 0x14d   : > { %v627_v16 = vpop.permute.xlu1 %626  ;;  %v683_v18 = vpop.permute.xlu0 %682 }
 0x14e   : > { %v639_v56 = vsel %vm636_vm3, %v625_v14, %v627_v16 }
 0x14f   : > { %v654_v14 = vadd.f32 %v639_v56, %v594_v0 }
 0x151   : > { %v621_v19 = vpop.permute.xlu1 %620  ;;  %v5590_v20 = vpop.permute.xlu0 %686 }
 0x152   : > { %v637_v41 = vsel %vm636_vm3, %v621_v19, %v623_v61  ;;  %v640_v61 = vsel %vm636_vm3, %v627_v16, %v5588_v15 }
 0x153   : > { %v652_v42 = vadd.f32 %v637_v41, %v592_v34  ;;  %v655_v37 = vadd.f32 %v640_v61, %v595_v6 }
 0x155   : > { %v685_v11 = vpop.permute.xlu1 %684  ;;  %v681_v8 = vpop.permute.xlu0 %680 }
 0x156   : > { %v697_v62 = vsel %vm696_vm4, %v681_v8, %v683_v18  ;;  %v698_v4 = vsel %vm696_vm4, %v683_v18, %v685_v11  ;;  %v699_v47 = vsel %vm696_vm4, %v685_v11, %v5590_v20 }
 0x157   : > { %v712_v48 = vadd.f32 %v697_v62, %v652_v42  ;;  %v713_v18 = vadd.f32 %v698_v4, %v653_v12  ;;  %v714_v32 = vadd.f32 %v699_v47, %v654_v14 }
 0x159   : > { %v5592_v21 = vpop.permute.xlu1 %688  ;;  %v745_v24 = vpop.permute.xlu0 %744 }
 0x15d   : > { %v743_v25 = vpop.permute.xlu1 %742  ;;  %v5594_v22 = vpop.permute.xlu0 %748 }
 0x15e   : > { %v758_v19 = vsel %vm756_vm5, %v743_v25, %v745_v24 }
 0x161   : > { %v5596_v27 = vpop.permute.xlu1 %746  ;;  %v803_v28 = vpop.permute.xlu0 %802 }
 0x162   : > { %v759_v8 = vsel %vm756_vm5, %v745_v24, %v5596_v27  ;;  %v773_v24 = vadd.f32 %v758_v19, %v713_v18  ;;  %v760_v43 = vsel %vm756_vm5, %v5596_v27, %v5594_v22 }
 0x163   : > { %v774_v38 = vadd.f32 %v759_v8, %v714_v32 }
 0x165   : > { %v741_v29 = vpop.permute.xlu1 %740  ;;  %v5598_v31 = vpop.permute.xlu0 %806 }
 0x166   : > { %v757_v5 = vsel %vm756_vm5, %v741_v29, %v743_v25  ;;  %v700_v29 = vsel %vm696_vm4, %v5590_v20, %v5592_v21 }
 0x167   : > { %v772_v33 = vadd.f32 %v757_v5, %v712_v48  ;;  %v715_v44 = vadd.f32 %v700_v29, %v655_v37 }
 0x169   : > { %v805_v54 = vpop.permute.xlu1 %804  ;;  %v863_v55 = vpop.permute.xlu0 %862  ;;  %v775_v41 = vadd.f32 %v760_v43, %v715_v44 }
 0x16a   : > { %v818_v36 = vsel %vm816_vm6, %v803_v28, %v805_v54  ;;  %v819_v16 = vsel %vm816_vm6, %v805_v54, %v5598_v31 }
 0x16b   : > { %v833_v46 = vadd.f32 %v818_v36, %v773_v24  ;;  %v834_v53 = vadd.f32 %v819_v16, %v774_v38 }
 0x16d   : > { %v5623_v1 = vpop.permute.xlu1 %808  ;;  %v867_v40 = vpop.permute.xlu0 %866 }
 0x16e   : > { %v820_v54 = vsel %vm816_vm6, %v5598_v31, %v5623_v1 }
 0x16f   : > { %v835_v34 = vadd.f32 %v820_v54, %v775_v41 }
 0x171   : > { %v801_v11 = vpop.permute.xlu1 %800  ;;  %v861_v35 = vpop.permute.xlu0 %860 }
 0x172   : > { %v817_v25 = vsel %vm816_vm6, %v801_v11, %v803_v28  ;;  %v877_v28 = vsel %vm876_vm7, %v861_v35, %v863_v55 }
 0x173   : > { %v832_v39 = vadd.f32 %v817_v25, %v772_v33 }
 0x175   : > { %v865_v30 = vpop.permute.xlu1 %864  ;;  %v5646_v20 = vpop.permute.xlu0 %452  ;;  %v892_v9 = vadd.f32 %v877_v28, %v832_v39 }
 0x176   : > { %v878_v23 = vsel %vm876_vm7, %v863_v55, %v865_v30  ;;  %v879_v45 = vsel %vm876_vm7, %v865_v30, %v867_v40 }
 0x177   : > { %v893_v59 = vadd.f32 %v878_v23, %v833_v46  ;;  %v894_v27 = vadd.f32 %v879_v45, %v834_v53  ;;  %v5664_v55 = vadd.f32 %v5553_v57, %v892_v9 }
 0x179   : > { %v5655_v10 = vadd.f32 %v5553_v57, %v893_v59  ;;  %v5658_v60 = vadd.f32 %v5553_v57, %v894_v27  ;;  %v869_v56 = vpop.permute.xlu1 %868  ;;  %v5660_v62 = vpop.permute.xlu0 %512 }
 0x17a   : > { %v880_v31 = vsel %vm876_vm7, %v867_v40, %v869_v56  ;;  %v914_v40 = vmax.f32 %v5664_v55, 0.0  ;;  %v4846_v55 = vld [vmem:[%s6692_s5 + $0x1e4] ss:$8 sps:$4 sm:$0xff]  }
 0x17b   : > { %v915_v58 = vmax.f32 %v5655_v10, 0.0  ;;  %v916_v63 = vmax.f32 %v5658_v60, 0.0  ;;  %v895_v0 = vadd.f32 %v880_v31, %v835_v34  ;;  %v4848_v10 = vld [vmem:[%s6692_s5 + $0x1e0] ss:$8 sps:$4 sm:$0xff]   ;;  %v4849_v60 = vld [vmem:[%s6692_s5 + $0x1d4] ss:$8 sps:$4 sm:$0xff]  }
 0x17d   : > { %v5669_v42 = vadd.f32 %v5553_v57, %v895_v0  ;;  %v451_v3 = vpop.permute.xlu1 %450  ;;  %v5671_v4 = vpop.permute.xlu0 %572  ;;  %v4715_v47 = vpack.i.bf16 %v916_v63, %v915_v58 }
 0x17e   : > { %v461_v7 = vsel %vm456_vm0, %v5576_v26, %v451_v3  ;;  %v462_v35 = vsel %vm456_vm0, %v451_v3, %v5646_v20 }
 0x17f   : > { %v917_v5 = vmax.f32 %v5669_v42, 0.0  ;;  %4716 = vrot.lane.b32.xlu1 %v4715_v47, %s5157_s14  ;;  %v476_v19 = vadd.f32 %v461_v7, %v5395_v49  ;;  %v477_v36 = vadd.f32 %v462_v35, %v5399_v50 }
 0x181   : > { %v511_v12 = vpop.permute.xlu1 %510  ;;  %v5682_v14 = vpop.permute.xlu0 %632  ;;  %v4720_v48 = vpack.i.bf16 %v914_v40, %v917_v5 }
 0x182   : > { %v521_v61 = vsel %vm516_vm1, %v5581_v2, %v511_v12  ;;  %v522_v49 = vsel %vm516_vm1, %v511_v12, %v5660_v62 }
 0x183   : > { %4721 = vrot.lane.b32.xlu0 %v4720_v48, %s5157_s14  ;;  %v536_v8 = vadd.f32 %v521_v61, %v476_v19  ;;  %v537_v37 = vadd.f32 %v522_v49, %v477_v36  ;;  %v4771_v61 = vld [vmem:[%s6692_s5 + $0x74] ss:$8 sps:$4 sm:$0xff]   ;;  %v4774_v19 = vld [vmem:[%s6692_s5 + $0x64] ss:$8 sps:$4 sm:$0xff]  }
 0x184   : > { %1732 = vmatprep.subr.bf16.mxu0 %v4771_v61  ;;  %v4791_v61 = vld [vmem:[%s6692_s5 + $0x10] ss:$8 sps:$4 sm:$0xff]  }
 0x185   : > { %v571_v6 = vpop.permute.xlu1 %570  ;;  %v5692_v18 = vpop.permute.xlu0 %692 }
 0x186   : > { %v581_v26 = vsel %vm576_vm2, %v5586_v13, %v571_v6  ;;  %v582_v13 = vsel %vm576_vm2, %v571_v6, %v5671_v4 }
 0x187   : > { %v596_v32 = vadd.f32 %v581_v26, %v536_v8  ;;  %v597_v38 = vadd.f32 %v582_v13, %v537_v37  ;;  %v4797_v13 = vld [vmem:[%s6692_s5 + $0x174] ss:$8 sps:$4 sm:$0xff]   ;;  %v4800_v37 = vld [vmem:[%s6692_s5 + $0x170] ss:$8 sps:$4 sm:$0xff]  }
 0x188   : > { %1773 = vmatprep.subr.bf16.mxu1 %v4797_v13  ;;  %v4825_v13 = vld [vmem:[%s6692_s5 + $0xa4] ss:$8 sps:$4 sm:$0xff]  }
 0x189   : > { %v631_v33 = vpop.permute.xlu1 %630  ;;  %v753_v11 = vpop.permute.xlu0 %752  ;;  %1774 = vmatpush1.bf16.msra.mxu1 %v4800_v37  ;;  %v4829_v37 = vld [vmem:[%s6692_s5 + $0xa0] ss:$8 sps:$4 sm:$0xff]  }
 0x18a   : > { %v641_v2 = vsel %vm636_vm3, %v5588_v15, %v631_v33  ;;  %v642_v24 = vsel %vm636_vm3, %v631_v33, %v5682_v14 }
 0x18b   : > { %v656_v29 = vadd.f32 %v641_v2, %v596_v32  ;;  %v657_v50 = vadd.f32 %v642_v24, %v597_v38  ;;  %v4776_v2 = vld [vmem:[%s6692_s5 + $0x60] ss:$8 sps:$4 sm:$0xff]   ;;  %v4803_v38 = vld [vmem:[%s6692_s5 + $0x164] ss:$8 sps:$4 sm:$0xff]  }
 0x18c   : > { %1775 = vmatprep.subr.bf16.mxu1 %v4803_v38 }
 0x18d   : > { %v691_v16 = vpop.permute.xlu1 %690  ;;  %v5703_v25 = vpop.permute.xlu0 %812 }
 0x18e   : > { %v701_v15 = vsel %vm696_vm4, %v5592_v21, %v691_v16  ;;  %v702_v44 = vsel %vm696_vm4, %v691_v16, %v5692_v18 }
 0x18f   : > { %v716_v30 = vadd.f32 %v701_v15, %v656_v29  ;;  %v717_v54 = vadd.f32 %v702_v44, %v657_v50  ;;  %v4780_v15 = vld [vmem:[%s6692_s5 + $0x44] ss:$8 sps:$4 sm:$0xff]   ;;  %v4806_v44 = vld [vmem:[%s6692_s5 + $0x160] ss:$8 sps:$4 sm:$0xff]  }
 0x190   : > { %1776 = vmatpush1.bf16.msra.mxu1 %v4806_v44 }
 0x191   : > { %v751_v39 = vpop.permute.xlu1 %750  ;;  %v873_v43 = vpop.permute.xlu0 %872 }
 0x192   : > { %v761_v46 = vsel %vm756_vm5, %v5594_v22, %v751_v39  ;;  %v762_v53 = vsel %vm756_vm5, %v751_v39, %v753_v11 }
 0x193   : > { %v776_v41 = vadd.f32 %v761_v46, %v716_v30  ;;  %v777_v9 = vadd.f32 %v762_v53, %v717_v54  ;;  %v4809_v46 = vld [vmem:[%s6692_s5 + $0x154] ss:$8 sps:$4 sm:$0xff]   ;;  %v4782_v53 = vld [vmem:[%s6692_s5 + $0x40] ss:$8 sps:$4 sm:$0xff]  }
 0x194   : > { %1777 = vmatprep.subr.bf16.mxu1 %v4809_v46 }
 0x195   : > { %v811_v28 = vpop.permute.xlu1 %810  ;;  %v5716_v23 = vpop.permute.xlu0 %514 }
 0x196   : > { %v821_v45 = vsel %vm816_vm6, %v5623_v1, %v811_v28  ;;  %v822_v21 = vsel %vm816_vm6, %v811_v28, %v5703_v25  ;;  %v523_v35 = vsel %vm516_vm1, %v5660_v62, %v5716_v23  ;;  %v4777_v62 = vld [vmem:[%s6692_s5 + $0x54] ss:$8 sps:$4 sm:$0xff]  }
 0x197   : > { %v836_v59 = vadd.f32 %v821_v45, %v776_v41  ;;  %v837_v27 = vadd.f32 %v822_v21, %v777_v9  ;;  %v4812_v45 = vld [vmem:[%s6692_s5 + $0x150] ss:$8 sps:$4 sm:$0xff]   ;;  %v4815_v41 = vld [vmem:[%s6692_s5 + $0x144] ss:$8 sps:$4 sm:$0xff]  }
 0x198   : > { %v4785_v9 = vld [vmem:[%s6692_s5 + $0x30] ss:$8 sps:$4 sm:$0xff]   ;;  %1778 = vmatpush1.bf16.msra.mxu1 %v4812_v45  ;;  %v4841_v45 = vld [vmem:[%s6692_s5 + $0x80] ss:$8 sps:$4 sm:$0xff]  }
 0x199   : > { %v871_v34 = vpop.permute.xlu1 %870  ;;  %v5722_v31 = vpop.permute.xlu0 %634  ;;  %1779 = vmatprep.subr.bf16.mxu1 %v4815_v41 }
 0x19a   : > { %v881_v22 = vsel %vm876_vm7, %v869_v56, %v871_v34  ;;  %v882_v0 = vsel %vm876_vm7, %v871_v34, %v873_v43  ;;  %v4773_v56 = vld [vmem:[%s6692_s5 + $0x70] ss:$8 sps:$4 sm:$0xff]   ;;  %v643_v24 = vsel %vm636_vm3, %v5682_v14, %v5722_v31  ;;  %v4821_v34 = vld [vmem:[%s6692_s5 + $0x134] ss:$8 sps:$4 sm:$0xff]   ;;  %vm2319_vm3 = vcmask 801792  }
 0x19b   : > { %v896_v3 = vadd.f32 %v881_v22, %v836_v59  ;;  %v897_v47 = vadd.f32 %v882_v0, %v837_v27  ;;  %1733 = vmatpush1.bf16.msra.mxu0 %v4773_v56  ;;  %v4818_v27 = vld [vmem:[%s6692_s5 + $0x140] ss:$8 sps:$4 sm:$0xff]   ;;  %v4789_v0 = vld [vmem:[%s6692_s5 + $0x14] ss:$8 sps:$4 sm:$0xff]   ;;  %v4792_v56 = vld [vmem:[%s6692_s5 + $0x4] ss:$8 sps:$4 sm:$0xff]  }
 0x19c   : > { %1734 = vmatprep.subr.bf16.mxu0 %v4774_v19  ;;  %v4788_v22 = vld [vmem:[%s6692_s5 + $0x20] ss:$8 sps:$4 sm:$0xff]   ;;  %1780 = vmatpush1.bf16.msra.mxu1 %v4818_v27 }
 0x19d   : > { %v5727_v7 = vadd.f32 %v5553_v57, %v896_v3  ;;  %v5730_v1 = vadd.f32 %v5553_v57, %v897_v47  ;;  %v5732_v12 = vpop.permute.xlu1 %454  ;;  %v5734_v48 = vpop.permute.xlu0 %754  ;;  %v4824_v3 = vld [vmem:[%s6692_s5 + $0x130] ss:$8 sps:$4 sm:$0xff]   ;;  %1781 = vmatprep.subr.bf16.mxu1 %v4821_v34  ;;  %v4827_v47 = vld [vmem:[%s6692_s5 + $0x124] ss:$8 sps:$4 sm:$0xff]   ;;  %v4830_v19 = vld [vmem:[%s6692_s5 + $0x120] ss:$8 sps:$4 sm:$0xff]  }
 0x19e   : > { %v463_v8 = vsel %vm456_vm0, %v5646_v20, %v5732_v12  ;;  %v763_v6 = vsel %vm756_vm5, %v753_v11, %v5734_v48  ;;  %v4845_v34 = vld [vmem:[%s6692_s5 + $0x1f0] ss:$8 sps:$4 sm:$0xff]   ;;  %vm5172_vm5 = vmmov 0  }
 0x19f   : > { %v918_v26 = vmax.f32 %v5727_v7, 0.0  ;;  %v919_v32 = vmax.f32 %v5730_v1, 0.0  ;;  %v478_v33 = vadd.f32 %v463_v8, %v5403_v51  ;;  %1735 = vmatpush1.bf16.msra.mxu0 %v4776_v2  ;;  %v4794_v8 = vld [vmem:[%s6692_s5] ss:$8 sps:$4 sm:$0xff]   ;;  %v4875_v1 = vld [vmem:[%s6692_s5 + $0x254] ss:$8 sps:$4 sm:$0xff]  }
 0x1a0   : > { %1736 = vmatprep.subr.bf16.mxu0 %v4777_v62  ;;  %1782 = vmatpush1.bf16.msra.mxu1 %v4824_v3  ;;  %v4805_v2 = vld [vmem:[%s6692_s5 + $0xe0] ss:$8 sps:$4 sm:$0xff]   ;;  %v4813_v62 = vld [vmem:[%s6692_s5 + $0xc4] ss:$8 sps:$4 sm:$0xff]  }
 0x1a1   : > { %v5759_v20 = vpop.permute.xlu1 %574  ;;  %v538_v29 = vadd.f32 %v523_v35, %v478_v33  ;;  %v5761_v11 = vpop.permute.xlu0 %874  ;;  %v4725_v51 = vpack.i.bf16 %v919_v32, %v918_v26  ;;  %1783 = vmatprep.subr.bf16.mxu1 %v4827_v47  ;;  %v4799_v33 = vld [vmem:[%s6692_s5 + $0xf0] ss:$8 sps:$4 sm:$0xff]   ;;  %v4801_v35 = vld [vmem:[%s6692_s5 + $0xe4] ss:$8 sps:$4 sm:$0xff]  }
 0x1a2   : > { %v583_v49 = vsel %vm576_vm2, %v5671_v4, %v5759_v20  ;;  %v883_v36 = vsel %vm876_vm7, %v873_v43, %v5761_v11  ;;  %v4779_v4 = vld [vmem:[%s6692_s5 + $0x50] ss:$8 sps:$4 sm:$0xff]   ;;  %vm3898_vm7 = vcmask 1043456  }
 0x1a3   : > { %v598_v16 = vadd.f32 %v583_v49, %v538_v29  ;;  %4726 = vrot.lane.b32.xlu1 %v4725_v51, %s5157_s14  ;;  %1737 = vmatpush1.bf16.msra.mxu0 %v4779_v4  ;;  %v4807_v29 = vld [vmem:[%s6692_s5 + $0xd4] ss:$8 sps:$4 sm:$0xff]   ;;  %v4811_v51 = vld [vmem:[%s6692_s5 + $0xd0] ss:$8 sps:$4 sm:$0xff]   ;;  %v4817_v49 = vld [vmem:[%s6692_s5 + $0xc0] ss:$8 sps:$4 sm:$0xff]  }
 0x1a4   : > { %1738 = vmatprep.subr.bf16.mxu0 %v4780_v15  ;;  %1784 = vmatpush1.bf16.msra.mxu1 %v4830_v19  ;;  %v4857_v19 = vld [vmem:[%s6692_s5 + $0x1b0] ss:$8 sps:$4 sm:$0xff]  }
 0x1a5   : > { %v5791_v39 = vpop.permute.xlu1 %694  ;;  %v658_v43 = vadd.f32 %v643_v24, %v598_v16  ;;  %v4823_v16 = vld [vmem:[%s6692_s5 + $0xb0] ss:$8 sps:$4 sm:$0xff]   ;;  %v479_v24 = vadd.f32 %v5732_v12, %v5407_v52  ;;  %v4833_v52 = vld [vmem:[%s6692_s5 + $0x114] ss:$8 sps:$4 sm:$0xff]  }
 0x1a6   : > { %v703_v14 = vsel %vm696_vm4, %v5692_v18, %v5791_v39  ;;  %v4783_v18 = vld [vmem:[%s6692_s5 + $0x34] ss:$8 sps:$4 sm:$0xff]   ;;  %1785 = vmatprep.subr.bf16.mxu1 %v4833_v52  ;;  %vm2761_vm4 = vcmask 1041408  }
 0x1a7   : > { %v718_v50 = vadd.f32 %v703_v14, %v658_v43  ;;  %1739 = vmatpush1.bf16.msra.mxu0 %v4782_v53  ;;  %v539_v4 = vadd.f32 %v5716_v23, %v479_v24  ;;  %v4835_v23 = vld [vmem:[%s6692_s5 + $0x90] ss:$8 sps:$4 sm:$0xff]   ;;  %v4837_v53 = vld [vmem:[%s6692_s5 + $0x84] ss:$8 sps:$4 sm:$0xff]  }
 0x1a8   : > { %1740 = vmatprep.subr.bf16.mxu0 %v4783_v18 }
 0x1a9   : > { %v5808_v30 = vpop.permute.xlu1 %814  ;;  %v778_v54 = vadd.f32 %v763_v6, %v718_v50  ;;  %v4795_v6 = vld [vmem:[%s6692_s5 + $0xf4] ss:$8 sps:$4 sm:$0xff]   ;;  %v599_v38 = vadd.f32 %v5759_v20, %v539_v4 }
 0x1aa   : > { %v823_v28 = vsel %vm816_vm6, %v5703_v25, %v5808_v30  ;;  %v4786_v25 = vld [vmem:[%s6692_s5 + $0x24] ss:$8 sps:$4 sm:$0xff]   ;;  %v4831_v50 = vld [vmem:[%s6692_s5 + $0x94] ss:$8 sps:$4 sm:$0xff]   ;;  %vm2757_vm6 = vcmask 293888  }
 0x1ab   : > { %v838_v21 = vadd.f32 %v823_v28, %v778_v54  ;;  %1741 = vmatpush1.bf16.msra.mxu0 %v4785_v9  ;;  %v659_v43 = vadd.f32 %v5722_v31, %v599_v38  ;;  %v4836_v31 = vld [vmem:[%s6692_s5 + $0x110] ss:$8 sps:$4 sm:$0xff]   ;;  %v4843_v9 = vld [vmem:[%s6692_s5 + $0x1f4] ss:$8 sps:$4 sm:$0xff]  }
 0x1ac   : > { %1742 = vmatprep.subr.bf16.mxu0 %v4786_v25  ;;  %1786 = vmatpush1.bf16.msra.mxu1 %v4836_v31  ;;  %v4887_v38 = vld [vmem:[%s6692_s5 + $0x374] ss:$8 sps:$4 sm:$0xff]  }
 0x1ad   : > { %v5825_v59 = vadd.f32 %v883_v36, %v838_v21  ;;  %v4819_v36 = vld [vmem:[%s6692_s5 + $0xb4] ss:$8 sps:$4 sm:$0xff]   ;;  %v719_v15 = vadd.f32 %v5791_v39, %v659_v43 }
 0x1af   : > { %1743 = vmatpush1.bf16.msra.mxu0 %v4788_v22  ;;  %v779_v14 = vadd.f32 %v5734_v48, %v719_v15  ;;  %v5935_v41 = vadd.f32 %v5553_v57, %v5825_v59 }
 0x1b0   : > { %1744 = vmatprep.subr.bf16.mxu0 %v4789_v0 }
 0x1b1   : > { %v839_v44 = vadd.f32 %v5808_v30, %v779_v14  ;;  %v4839_v30 = vld [vmem:[%s6692_s5 + $0x104] ss:$8 sps:$4 sm:$0xff]   ;;  %v920_v3 = vmax.f32 %v5935_v41, 0.0  ;;  %v4879_v41 = vld [vmem:[%s6692_s5 + $0x230] ss:$8 sps:$4 sm:$0xff]  }
 0x1b2   : > { %1787 = vmatprep.subr.bf16.mxu1 %v4839_v30 }
 0x1b3   : > { %1745 = vmatpush1.bf16.msra.mxu0 %v4791_v61  ;;  %v899_v39 = vadd.f32 %v5761_v11, %v839_v44  ;;  %v4842_v11 = vld [vmem:[%s6692_s5 + $0x100] ss:$8 sps:$4 sm:$0xff]  }
 0x1b4   : > { %1746 = vmatprep.subr.bf16.mxu0 %v4792_v56  ;;  %1788 = vmatpush1.bf16.msra.mxu1 %v4842_v11  ;;  %v4854_v61 = vld [vmem:[%s6692_s5 + $0x1c0] ss:$8 sps:$4 sm:$0xff]   ;;  %v4855_v56 = vld [vmem:[%s6692_s5 + $0x1b4] ss:$8 sps:$4 sm:$0xff]  }
 0x1b5   : > { %v5931_v21 = vadd.f32 %v5553_v57, %v899_v39  ;;  %1789 = vmatprep.subr.bf16.mxu1 %v4843_v9  ;;  %v4876_v11 = vld [vmem:[%s6692_s5 + $0x240] ss:$8 sps:$4 sm:$0xff]   ;;  %v4884_v9 = vld [vmem:[%s6692_s5 + $0x224] ss:$8 sps:$4 sm:$0xff]  }
 0x1b7   : > { %1747 = vmatpush1.bf16.msra.mxu0 %v4794_v8  ;;  %v921_v47 = vmax.f32 %v5931_v21, 0.0  ;;  %v4858_v8 = vld [vmem:[%s6692_s5 + $0x1a4] ss:$8 sps:$4 sm:$0xff]   ;;  %v4881_v21 = vld [vmem:[%s6692_s5 + $0x234] ss:$8 sps:$4 sm:$0xff]  }
 0x1b8   : > { %1748 = vmatprep.subr.bf16.mxu0 %v4795_v6  ;;  %1790 = vmatpush2.bf16.msra.mxu1 %v4845_v34  ;;  %v4860_v6 = vld [vmem:[%s6692_s5 + $0x1a0] ss:$8 sps:$4 sm:$0xff]   ;;  %v4888_v34 = vld [vmem:[%s6692_s5 + $0x210] ss:$8 sps:$4 sm:$0xff]  }
 0x1b9   : > { %1791 = vmatprep.subr.bf16.mxu1 %v4846_v55 }
 0x1bb   : > { %1749 = vmatpush2.bf16.msra.mxu0 %v4799_v33  ;;  %v4861_v33 = vld [vmem:[%s6692_s5 + $0x194] ss:$8 sps:$4 sm:$0xff]  }
 0x1bc   : > { %1750 = vmatprep.subr.bf16.mxu0 %v4801_v35  ;;  %1792 = vmatpush2.bf16.msra.mxu1 %v4848_v10  ;;  %v4863_v35 = vld [vmem:[%s6692_s5 + $0x190] ss:$8 sps:$4 sm:$0xff]  }
 0x1bd   : > { %1793 = vmatprep.subr.bf16.mxu1 %v4849_v60  ;;  %v4902_v60 = vld [vmem:[%s6692_s5 + $0x2f4] ss:$8 sps:$4 sm:$0xff]  }
 0x1bf   : > { %1751 = vmatpush2.bf16.msra.mxu0 %v4805_v2  ;;  %v4864_v2 = vld [vmem:[%s6692_s5 + $0x184] ss:$8 sps:$4 sm:$0xff]  }
 0x1c0   : > { %1752 = vmatprep.subr.bf16.mxu0 %v4807_v29  ;;  %v4866_v29 = vld [vmem:[%s6692_s5 + $0x180] ss:$8 sps:$4 sm:$0xff]  }
 0x1c3   : > { %1753 = vmatpush2.bf16.msra.mxu0 %v4811_v51 }
 0x1c4   : > { %1754 = vmatprep.subr.bf16.mxu0 %v4813_v62 }
 0x1c7   : > { %1755 = vmatpush2.bf16.msra.mxu0 %v4817_v49 }
 0x1c8   : > { %1756 = vmatprep.subr.bf16.mxu0 %v4819_v36 }
 0x1cb   : > { %1757 = vmatpush2.bf16.msra.mxu0 %v4823_v16 }
 0x1cc   : > { %1758 = vmatprep.subr.bf16.mxu0 %v4825_v13  ;;  %v4869_v13 = vld [vmem:[%s6692_s5 + $0x274] ss:$8 sps:$4 sm:$0xff]  }
 0x1cf   : > { %1759 = vmatpush2.bf16.msra.mxu0 %v4829_v37 }
 0x1d0   : > { %1760 = vmatprep.subr.bf16.mxu0 %v4831_v50 }
 0x1d3   : > { %1761 = vmatpush2.bf16.msra.mxu0 %v4835_v23 }
 0x1d4   : > { %1762 = vmatprep.subr.bf16.mxu0 %v4837_v53  ;;  %v4872_v53 = vld [vmem:[%s6692_s5 + $0x264] ss:$8 sps:$4 sm:$0xff]  }
 0x1d7   : > { %1763 = vmatpush2.bf16.msra.mxu0 %v4841_v45  ;;  %v4878_v45 = vld [vmem:[%s6692_s5 + $0x244] ss:$8 sps:$4 sm:$0xff]  }
 0x1d8   : > { %1814 = vmatprep.subr.bf16.mxu0 %v4869_v13  ;;  %v4911_v13 = vld [vmem:[%s6692_s5 + $0x334] ss:$8 sps:$4 sm:$0xff]  }
 0x1f1   : > { %v4717_v12 = vpop.permute.xlu1 %4716 }
 0x1f2   : > { %v4719_v48 = vunpack.i.h.bf16 %v4717_v12  ;;  %v4718_v20 = vunpack.i.l.bf16 %v4717_v12 }
 0x1f4   : > { %v947_v54 = vsel %vm456_vm0, %v4718_v20, %v4719_v48 }
 0x1f5   : > { %v4722_v46 = vpop.permute.xlu0 %4721  ;;  %v962_v59 = vmax.f32 %v915_v58, %v947_v54  ;;  %v4735_v58 = vpack.i.bf16 %v921_v47, %v920_v3 }
 0x1f6   : > { %v4724_v18 = vunpack.i.h.bf16 %v4722_v46  ;;  %v4723_v28 = vunpack.i.l.bf16 %v4722_v46 }
 0x1f8   : > { %v948_v25 = vsel %vm456_vm0, %v4719_v48, %v4723_v28  ;;  %v946_v27 = vsel %vm456_vm0, %v4724_v18, %v4718_v20  ;;  %v4867_v48 = vld [vmem:[%s6692_s5 + $0x270] ss:$8 sps:$4 sm:$0xff]  }
 0x1f9   : > { %v961_v57 = vmax.f32 %v914_v40, %v946_v27  ;;  %v5951_v22 = vmax.f32 %v916_v63, %v948_v25  ;;  %v4851_v63 = vld [vmem:[%s6692_s5 + $0x1d0] ss:$8 sps:$4 sm:$0xff]   ;;  %v4852_v40 = vld [vmem:[%s6692_s5 + $0x1c4] ss:$8 sps:$4 sm:$0xff]   ;;  %v4882_v25 = vld [vmem:[%s6692_s5 + $0x220] ss:$8 sps:$4 sm:$0xff]  }
 0x1fa   : > { %1794 = vmatpush2.bf16.msra.mxu1 %v4851_v63  ;;  %v4890_v27 = vld [vmem:[%s6692_s5 + $0x214] ss:$8 sps:$4 sm:$0xff]  }
 0x1fb   : > { %977 = vrot.lane.b32.xlu1 %v961_v57, %s5159_s17  ;;  %v4730_v0 = vpack.i.bf16 %v5951_v22, %v962_v59  ;;  %1795 = vmatprep.subr.bf16.mxu1 %v4852_v40 }
 0x1fd   : > { %4731 = vrot.lane.b32.xlu0 %v4730_v0, %s5159_s17 }
 0x1fe   : > { %1796 = vmatpush2.bf16.msra.mxu1 %v4854_v61 }
 0x1ff   : > { %1797 = vmatprep.subr.bf16.mxu1 %v4855_v56  ;;  %v4885_v56 = vld [vmem:[%s6692_s5 + $0x370] ss:$8 sps:$4 sm:$0xff]  }
 0x201   : > { %4736 = vrot.lane.b32.xlu0 %v4735_v58, %s5157_s14 }
 0x202   : > { %1798 = vmatpush2.bf16.msra.mxu1 %v4857_v19  ;;  %v4900_v19 = vld [vmem:[%s6692_s5 + $0x2f0] ss:$8 sps:$4 sm:$0xff]  }
 0x203   : > { %1799 = vmatprep.subr.bf16.mxu1 %v4858_v8  ;;  %v4893_v8 = vld [vmem:[%s6692_s5 + $0x364] ss:$8 sps:$4 sm:$0xff]  }
 0x206   : > { %1800 = vmatpush2.bf16.msra.mxu1 %v4860_v6  ;;  %v4891_v6 = vld [vmem:[%s6692_s5 + $0x360] ss:$8 sps:$4 sm:$0xff]  }
 0x207   : > { %1801 = vmatprep.subr.bf16.mxu1 %v4861_v33  ;;  %v4906_v33 = vld [vmem:[%s6692_s5 + $0x2e0] ss:$8 sps:$4 sm:$0xff]  }
 0x20a   : > { %1802 = vmatpush2.bf16.msra.mxu1 %v4863_v35  ;;  %v4899_v35 = vld [vmem:[%s6692_s5 + $0x354] ss:$8 sps:$4 sm:$0xff]  }
 0x20b   : > { %1803 = vmatprep.subr.bf16.mxu1 %v4864_v2  ;;  %v4914_v2 = vld [vmem:[%s6692_s5 + $0x2d4] ss:$8 sps:$4 sm:$0xff]  }
 0x20e   : > { %1804 = vmatpush2.bf16.msra.mxu1 %v4866_v29  ;;  %v4897_v29 = vld [vmem:[%s6692_s5 + $0x350] ss:$8 sps:$4 sm:$0xff]  }
 0x20f   : > { %1855 = vmatprep.subr.bf16.mxu1 %v4887_v38  ;;  %v4924_v38 = vld [vmem:[%s6692_s5 + $0x2b0] ss:$8 sps:$4 sm:$0xff]  }
 0x215   : > { %v4727_v51 = vpop.permute.xlu1 %4726 }
 0x216   : > { %v4729_v62 = vunpack.i.h.bf16 %v4727_v51  ;;  %v4728_v49 = vunpack.i.l.bf16 %v4727_v51  ;;  %v4912_v51 = vld [vmem:[%s6692_s5 + $0x2d0] ss:$8 sps:$4 sm:$0xff]  }
 0x218   : > { %v949_v36 = vsel %vm456_vm0, %v4723_v28, %v4728_v49  ;;  %v950_v16 = vsel %vm456_vm0, %v4728_v49, %v4729_v62  ;;  %v4870_v28 = vld [vmem:[%s6692_s5 + $0x260] ss:$8 sps:$4 sm:$0xff]   ;;  %v4920_v49 = vld [vmem:[%s6692_s5 + $0x2c4] ss:$8 sps:$4 sm:$0xff]  }
 0x219   : > { %v6010_v37 = vmax.f32 %v917_v5, %v949_v36  ;;  %v6014_v24 = vmax.f32 %v918_v26, %v950_v16  ;;  %v4903_v36 = vld [vmem:[%s6692_s5 + $0x340] ss:$8 sps:$4 sm:$0xff]  }
 0x21a   : > { %v4918_v16 = vld [vmem:[%s6692_s5 + $0x2c0] ss:$8 sps:$4 sm:$0xff]  }
 0x21b   : > { %v4740_v4 = vpack.i.bf16 %v6014_v24, %v6010_v37 }
 0x21d   : > { %4741 = vrot.lane.b32.xlu1 %v4740_v4, %s5159_s17  ;;  %v4909_v4 = vld [vmem:[%s6692_s5 + $0x330] ss:$8 sps:$4 sm:$0xff]  }
 0x26d   : > { %v978_v5 = vpop.permute.xlu1 %977 }
 0x26f   : > { %v4732_v43 = vpop.permute.xlu0 %4731 }
 0x270   : > { %v4734_v15 = vunpack.i.h.bf16 %v4732_v43  ;;  %v4733_v42 = vunpack.i.l.bf16 %v4732_v43  ;;  %v4917_v43 = vld [vmem:[%s6692_s5 + $0x324] ss:$8 sps:$4 sm:$0xff]  }
 0x272   : > { %v994_v14 = vsel %vm576_vm2, %v4733_v42, %v4734_v15  ;;  %v993_v7 = vsel %vm576_vm2, %v978_v5, %v4733_v42  ;;  %v4915_v42 = vld [vmem:[%s6692_s5 + $0x320] ss:$8 sps:$4 sm:$0xff]  }
 0x273   : > { %v4737_v26 = vpop.permute.xlu0 %4736  ;;  %v1009_v44 = vmax.f32 %v962_v59, %v994_v14  ;;  %v1008_v50 = vmax.f32 %v961_v57, %v993_v7  ;;  %v4896_v57 = vld [vmem:[%s6692_s5 + $0x204] ss:$8 sps:$4 sm:$0xff]   ;;  %v4930_v5 = vld [vmem:[%s6692_s5 + $0x2a0] ss:$8 sps:$4 sm:$0xff]   ;;  %v4923_v14 = vld [vmem:[%s6692_s5 + $0x314] ss:$8 sps:$4 sm:$0xff]  }
 0x274   : > { %v4739_v52 = vunpack.i.h.bf16 %v4737_v26  ;;  %v4738_v23 = vunpack.i.l.bf16 %v4737_v26  ;;  %v4938_v7 = vld [vmem:[%s6692_s5 + $0x294] ss:$8 sps:$4 sm:$0xff]   ;;  %v5165_v26 = vmov 65535  }
 0x275   : > { %v1017_v12 = vpack.c.bf16 %v1009_v44, %v1009_v44  ;;  %v1016_v31 = vpack.c.bf16 %v1008_v50, %v1008_v50  ;;  %v1724_v44 = vsel %vm1722_vm8, 4294967295, %v5165_v26  ;;  %v4921_v50 = vld [vmem:[%s6692_s5 + $0x310] ss:$8 sps:$4 sm:$0xff]   ;;  %vm3894_vm8 = vcmask 982016  }
 0x276   : > { %v6027_v20 = vmax.f32 %v921_v47, %v4739_v52  ;;  %v951_v39 = vsel %vm456_vm0, %v4729_v62, %v4738_v23  ;;  %v952_v46 = vsel %vm456_vm0, %v4738_v23, %v4739_v52  ;;  %v4894_v47 = vld [vmem:[%s6692_s5 + $0x200] ss:$8 sps:$4 sm:$0xff]   ;;  %v4905_v62 = vld [vmem:[%s6692_s5 + $0x344] ss:$8 sps:$4 sm:$0xff]   ;;  %v4936_v23 = vld [vmem:[%s6692_s5 + $0x290] ss:$8 sps:$4 sm:$0xff]  }
 0x277   : > { %1764 = vmatprep.mubr.bf16.mxu0 %v1017_v12  ;;  %v6036_v30 = vmax.f32 %v919_v32, %v951_v39  ;;  %v6040_v54 = vmax.f32 %v920_v3, %v952_v46  ;;  %v4873_v32 = vld [vmem:[%s6692_s5 + $0x250] ss:$8 sps:$4 sm:$0xff]   ;;  %v4929_v52 = vld [vmem:[%s6692_s5 + $0x304] ss:$8 sps:$4 sm:$0xff]   ;;  %v4927_v39 = vld [vmem:[%s6692_s5 + $0x300] ss:$8 sps:$4 sm:$0xff]  }
 0x278   : > { %991 = vrot.lane.b32.xlu1 %v6027_v20, %s5159_s17  ;;  %1765 = vmatmul.mubr.bf16.vlgmr.msra.gmra.mxu0 %v1016_v31  ;;  %v4935_v12 = vld [vmem:[%s6692_s5 + $0x394] ss:$8 sps:$4 sm:$0x7f]   ;;  %v4944_v31 = vld [vmem:[%s6692_s5 + $0x284] ss:$8 sps:$4 sm:$0xff]  }
 0x279   : > { %v4745_v18 = vpack.i.bf16 %v6040_v54, %v6036_v30  ;;  %1815 = vmatpush1.bf16.msra.mxu0 %v4867_v48  ;;  %v1725_v48 = vsel %vm1723_vm9, %v1724_v44, 0  ;;  %v4933_v46 = vld [vmem:[%s6692_s5 + $0x390] ss:$8 sps:$4 sm:$0x7f]  }
 0x27a   : > { %1816 = vmatprep.subr.bf16.mxu0 %v4872_v53  ;;  %v4942_v53 = vld [vmem:[%s6692_s5 + $0x280] ss:$8 sps:$4 sm:$0xff]  }
 0x27b   : > { %4746 = vrot.lane.b32.xlu0 %v4745_v18, %s5159_s17  ;;  %v1730_v18 = vand.u32 %v4935_v12, %v1725_v48 }
 0x27d   : > { %1817 = vmatpush1.bf16.msra.mxu0 %v4870_v28  ;;  %v1727_v28 = vand.u32 %v4933_v46, %v1725_v48  ;;  %v4947_v48 = vld [vmem:[%s6690_s3 + $0x18] sm:$0xff]  }
 0x27e   : > { %1818 = vmatprep.subr.bf16.mxu0 %v4875_v1  ;;  %v4941_v1 = vld [vmem:[%s6692_s5 + $0x384] ss:$8 sps:$4 sm:$0xff]  }
 0x281   : > { %1819 = vmatpush1.bf16.msra.mxu0 %v4873_v32  ;;  %v4939_v32 = vld [vmem:[%s6692_s5 + $0x380] ss:$8 sps:$4 sm:$0xff]  }
 0x282   : > { %1820 = vmatprep.subr.bf16.mxu0 %v4878_v45 }
 0x285   : > { %1821 = vmatpush1.bf16.msra.mxu0 %v4876_v11 }
 0x286   : > { %1822 = vmatprep.subr.bf16.mxu0 %v4881_v21 }
 0x289   : > { %1823 = vmatpush1.bf16.msra.mxu0 %v4879_v41 }
 0x28a   : > { %1824 = vmatprep.subr.bf16.mxu0 %v4884_v9 }
 0x28d   : > { %1825 = vmatpush1.bf16.msra.mxu0 %v4882_v25 }
 0x28e   : > { %1826 = vmatprep.subr.bf16.mxu0 %v4890_v27 }
 0x28f   : > { %v6083_v59 = vpop.permute.xlu1 %4741 }
 0x290   : > { %v4744_v0 = vunpack.i.h.bf16 %v6083_v59  ;;  %v4743_v3 = vunpack.i.l.bf16 %v6083_v59 }
 0x291   : > { %1827 = vmatpush1.bf16.msra.mxu0 %v4888_v34 }
 0x292   : > { %v996_v55 = vsel %vm576_vm2, %v4743_v3, %v4744_v0  ;;  %v995_v10 = vsel %vm576_vm2, %v4734_v15, %v4743_v3  ;;  %1828 = vmatprep.subr.bf16.mxu0 %v4896_v57  ;;  %v4932_v15 = vld [vmem:[%s6692_s5 + $0x2a4] ss:$8 sps:$4 sm:$0xff]  }
 0x293   : > { %v1011_v58 = vmax.f32 %v6010_v37, %v996_v55  ;;  %v1010_v63 = vmax.f32 %v5951_v22, %v995_v10  ;;  %v4908_v22 = vld [vmem:[%s6692_s5 + $0x2e4] ss:$8 sps:$4 sm:$0xff]   ;;  %v4926_v37 = vld [vmem:[%s6692_s5 + $0x2b4] ss:$8 sps:$4 sm:$0xff]  }
 0x295   : > { %v1019_v40 = vpack.c.bf16 %v1011_v58, %v1011_v58  ;;  %v1018_v61 = vpack.c.bf16 %v1010_v63, %v1010_v63  ;;  %1829 = vmatpush1.bf16.msra.mxu0 %v4894_v47 }
 0x296   : > { %1830 = vmatprep.subr.bf16.mxu0 %v4902_v60 }
 0x297   : > { %1805 = vmatprep.mubr.bf16.mxu1 %v1019_v40 }
 0x298   : > { %1806 = vmatmul.mubr.bf16.vlgmr.msra.gmra.mxu1 %v1018_v61 }
 0x299   : > { %1856 = vmatpush1.bf16.msra.mxu1 %v4885_v56  ;;  %1831 = vmatpush2.bf16.msra.mxu0 %v4900_v19 }
 0x29a   : > { %1857 = vmatprep.subr.bf16.mxu1 %v4893_v8  ;;  %1832 = vmatprep.subr.bf16.mxu0 %v4908_v22 }
 0x29d   : > { %1858 = vmatpush1.bf16.msra.mxu1 %v4891_v6  ;;  %1833 = vmatpush2.bf16.msra.mxu0 %v4906_v33 }
 0x29e   : > { %1859 = vmatprep.subr.bf16.mxu1 %v4899_v35  ;;  %1834 = vmatprep.subr.bf16.mxu0 %v4914_v2 }
 0x2a1   : > { %1860 = vmatpush1.bf16.msra.mxu1 %v4897_v29  ;;  %1835 = vmatpush2.bf16.msra.mxu0 %v4912_v51 }
 0x2a2   : > { %1861 = vmatprep.subr.bf16.mxu1 %v4905_v62  ;;  %1836 = vmatprep.subr.bf16.mxu0 %v4920_v49 }
 0x2a5   : > { %1862 = vmatpush1.bf16.msra.mxu1 %v4903_v36  ;;  %1837 = vmatpush2.bf16.msra.mxu0 %v4918_v16 }
 0x2a6   : > { %1863 = vmatprep.subr.bf16.mxu1 %v4911_v13  ;;  %1838 = vmatprep.subr.bf16.mxu0 %v4926_v37  ;;  %v2517_v37 = vld [vmem:[%s6691_s4] sm:$0xff] }
 0x2a9   : > { %1864 = vmatpush1.bf16.msra.mxu1 %v4909_v4  ;;  %1839 = vmatpush2.bf16.msra.mxu0 %v4924_v38  ;;  %v2518_v4 = vld [vmem:[%s6691_s4 + $0x8] sm:$0xff] }
 0x2aa   : > { %1865 = vmatprep.subr.bf16.mxu1 %v4917_v43  ;;  %1840 = vmatprep.subr.bf16.mxu0 %v4932_v15 }
 0x2ad   : > { %1866 = vmatpush1.bf16.msra.mxu1 %v4915_v42  ;;  %1841 = vmatpush2.bf16.msra.mxu0 %v4930_v5 }
 0x2ae   : > { %1867 = vmatprep.subr.bf16.mxu1 %v4923_v14  ;;  %1842 = vmatprep.subr.bf16.mxu0 %v4938_v7  ;;  %v4945_v14 = vld [vmem:[%s6690_s3 + $0x8] sm:$0xff]  }
 0x2b1   : > { %1868 = vmatpush1.bf16.msra.mxu1 %v4921_v50  ;;  %1843 = vmatpush2.bf16.msra.mxu0 %v4936_v23 }
 0x2b2   : > { %1869 = vmatprep.subr.bf16.mxu1 %v4929_v52  ;;  %1844 = vmatprep.subr.bf16.mxu0 %v4944_v31  ;;  %v4946_v31 = vld [vmem:[%s6690_s3] sm:$0xff]  }
 0x2b5   : > { %1870 = vmatpush1.bf16.msra.mxu1 %v4927_v39  ;;  %1845 = vmatpush2.bf16.msra.mxu0 %v4942_v53 }
 0x2b6   : > { %1883 = vmatprep.subr.bf16.mxu1 %v1730_v18 }
 0x2b9   : > { %1884 = vmatpush2.bf16.msra.mxu1 %v1727_v28 }
 0x2ba   : > { %1885 = vmatprep.subr.bf16.mxu1 %v4941_v1 }
 0x2bd   : > { %1886 = vmatpush2.bf16.msra.mxu1 %v4939_v32 }
 0x2ea   : > { %v992_v45 = vpop.permute.xlu1 %991 }
 0x2eb   : > { %v1015_v11 = vmax.f32 %v6027_v20, %v992_v45 }
 0x2ed   : > { %v1023_v21 = vpack.c.bf16 %v1015_v11, %v1015_v11  ;;  %v4747_v41 = vpop.permute.xlu0 %4746  ;;  %v4948_v11 = vld [vmem:[%s6690_s3 + $0x10] sm:$0xff]  }
 0x2ee   : > { %v4749_v9 = vunpack.i.h.bf16 %v4747_v41  ;;  %v4748_v25 = vunpack.i.l.bf16 %v4747_v41 }
 0x2ef   : > { %4158 = vmatprep.mubr.msk.bf16.mxu1 %vm1718_vm10, %v1023_v21  ;;  %v4949_v21 = vld [vmem:[%s6690_s3 + $0x28] sm:$0xff]  }
 0x2f0   : > { %v999_v27 = vsel %vm576_vm2, %v4749_v9, %v992_v45  ;;  %v997_v34 = vsel %vm576_vm2, %v4744_v0, %v4748_v25  ;;  %v998_v57 = vsel %vm576_vm2, %v4748_v25, %v4749_v9 }
 0x2f1   : > { %v1014_v3 = vmax.f32 %v6040_v54, %v999_v27  ;;  %v1012_v47 = vmax.f32 %v6014_v24, %v997_v34  ;;  %v1013_v20 = vmax.f32 %v6036_v30, %v998_v57 }
 0x2f3   : > { %v1021_v55 = vpack.c.bf16 %v1013_v20, %v1013_v20  ;;  %v1022_v10 = vpack.c.bf16 %v1014_v3, %v1014_v3  ;;  %v1020_v60 = vpack.c.bf16 %v1012_v47, %v1012_v47  ;;  %v4950_v47 = vld [vmem:[%s6690_s3 + $0x20] sm:$0xff]   ;;  %v4952_v20 = vld [vmem:[%s6690_s3 + $0x38] sm:$0xff]  }
 0x2f5   : > { %1846 = vmatprep.mubr.bf16.mxu0 %v1021_v55  ;;  %1888 = vmatmul.mubr.bf16.vlgmr.msra.gmra.mxu1 %v1022_v10 }
 0x2f6   : > { %1847 = vmatmul.mubr.bf16.vlgmr.msra.gmra.mxu0 %v1020_v60  ;;  %1959 = vmatprep.mubr.bf16.mxu1 %v5155_v17 }
 0x2f7   : > { %2152 = vmatprep.mubr.bf16.mxu0 %v5155_v17 }
 0x338   : > { %v1766_v59 = vpop.f32.mrf.mxu0 }
 0x33a   : > { %v1768_v0 = vpop.f32.mrf.mxu0 }
 0x33c   : > { %v1770_v58 = vpop.f32.mrf.mxu0 }
 0x33e   : > { %v1771_v63 = vpop.f32.mrf.mxu0 }
 0x358   : > { %v1807_v40 = vpop.f32.mrf.mxu1 }
 0x359   : > { %v1808_v54 = vadd.f32 %v1807_v40, %v1766_v59  ;;  %v4953_v40 = vld [vmem:[%s6690_s3 + $0x40] sm:$0xff]  }
 0x35a   : > { %v1809_v61 = vpop.f32.mrf.mxu1 }
 0x35b   : > { %v1810_v24 = vadd.f32 %v1809_v61, %v1768_v0  ;;  %v4951_v0 = vld [vmem:[%s6690_s3 + $0x30] sm:$0xff]  }
 0x35c   : > { %v1811_v56 = vpop.f32.mrf.mxu1 }
 0x35e   : > { %v1812_v30 = vpop.f32.mrf.mxu1 }
 0x3b5   : > { %v1889_v19 = vpop.f32.mrf.mxu1 }
 0x3b6   : > { %v1848_v8 = vpop.f32.mrf.mxu0 }
 0x3b7   : > { %v1849_v22 = vadd.f32 %v1848_v8, %v1808_v54  ;;  %v1891_v6 = vpop.f32.mrf.mxu1 }
 0x3b8   : > { %v1850_v33 = vpop.f32.mrf.mxu0 }
 0x3b9   : > { %v1890_v35 = vadd.f32 %v1889_v19, %v1849_v22  ;;  %v1851_v2 = vadd.f32 %v1850_v33, %v1810_v24  ;;  %v1893_v29 = vpop.f32.mrf.mxu1 }
 0x3ba   : > { %v1852_v51 = vpop.f32.mrf.mxu0 }
 0x3bb   : > { %v1896_v62 = vpack.c.bf16 %v1890_v35, %v1890_v35  ;;  %v1892_v49 = vadd.f32 %v1891_v6, %v1851_v2  ;;  %v1894_v36 = vpop.f32.mrf.mxu1 }
 0x3bc   : > { %v1853_v16 = vpop.f32.mrf.mxu0 }
 0x3bd   : > { %v1897_v13 = vpack.c.bf16 %v1892_v49, %v1892_v49  ;;  %1910 = vrot.lane.b32.xlu0 %v1896_v62, %s5157_s14  ;;  %v1979_v44 = vsel %vm1920_vm11, %v1896_v62, 0 }
 0x3bf   : > { %1912 = vrot.lane.b32.xlu1 %v1897_v13, %s5157_s14 }
 0x3c1   : > { %2035 = vrot.lane.b32.xlu0 %v1896_v62, %s6711_s16 }
 0x3c3   : > { %2037 = vrot.lane.b32.xlu1 %v1897_v13, %s6711_s16  ;;  %s349_s16 = sand.u32 1, %s5134_s10  }
 0x3c4   : > { %s3944_s28 = scalar_lea.sflag [#allocation4], %s349_s16 }
 0x3c5   : > { %2105 = vrot.lane.b32.xlu0 %v1896_v62, %s5166_s21 }
 0x3c7   : > { %2107 = vrot.lane.b32.xlu1 %v1897_v13, %s5166_s21 }
 0x3c9   : > { %2175 = vrot.lane.b32.xlu0 %v1896_v62, %s5167_s23 }
 0x3cb   : > { %2177 = vrot.lane.b32.xlu1 %v1897_v13, %s5167_s23  ;;  %s350_s23 = scalar_lea.vmem [#allocation7], %s349_s16 }
 0x3cd   : > { %2245 = vrot.lane.b32.xlu0 %v1896_v62, %s5168_s25 }
 0x3cf   : > { %2247 = vrot.lane.b32.xlu1 %v1897_v13, %s5168_s25  ;;  %s4363_s25 = sshll.u32 %s5245_s13, 4  ;;  %s5173_s13 = smov [#allocation7]  }
 0x3d1   : > { %2315 = vrot.lane.b32.xlu0 %v1896_v62, %s5169_s26 }
 0x3d3   : > { %2317 = vrot.lane.b32.xlu1 %v1897_v13, %s5169_s26 }
 0x3d5   : > { %2385 = vrot.lane.b32.xlu0 %v1896_v62, %s5170_s27 }
 0x3d7   : > { %2387 = vrot.lane.b32.xlu1 %v1897_v13, %s5170_s27  ;;  %s6648_s27 = scalar_lea.hbm %s6696_s9, %s4363_s25 }
 0x3d9   : > { %2455 = vrot.lane.b32.xlu0 %v1896_v62, %s5159_s17 }
 0x3db   : > { %2457 = vrot.lane.b32.xlu1 %v1897_v13, %s5159_s17  ;;  %s3956_s17 = sshll.u32 %s350_s23, 4  ;;  %s6643_s17 = int_to_ptr.vmem [resolvable:$true] %s3956_s17 }
 0x3dc   : > { %s5074_s29 = scalar_lea.vmem %s6643_s17, 16 }
 0x3dd   : > { %2521 = vperm.xlu0 %4714, %v2517_v37   ;;  %p5075_p12 = scmp.ne.s32.totalorder %s6643_s17, %s5074_s29 }
 0x3df   : > { %2526 = vperm.xlu1 %4750, %v2518_v4   ;;  %p5076_p4 = pnand %p5075_p12, %p6712_p13 }
 0x3e1   : > { %p5077_p7 = pneg %p5076_p4 }
 0x42f   : > { %v1911_v38 = vpop.permute.xlu0 %1910 }
 0x431   : > { %v1913_v43 = vpop.permute.xlu1 %1912 }
 0x432   : > { %v1915_v15 = vsel %vm456_vm0, %v1911_v38, %v1913_v43  ;;  %4162 = vmatprep.subr.msk.bf16.mxu1 %vm1920_vm11, %v1913_v43 }
 0x433   : > { %v1922_v42 = vsel %vm1920_vm11, %v1915_v15, 0  ;;  %v2036_v5 = vpop.permute.xlu0 %2035 }
 0x434   : > { %1942 = vmatpush1.bf16.msra.mxu1 %v1922_v42 }
 0x435   : > { %v2038_v7 = vpop.permute.xlu1 %2037  ;;  %4165 = vmatprep.subr.msk.bf16.mxu1 %vm1920_vm11, %v1897_v13 }
 0x436   : > { %v2040_v39 = vsel %vm516_vm1, %v2036_v5, %v2038_v7  ;;  %vm2389_vm1 = vcmask 793600  }
 0x437   : > { %4163 = vmatmul.mubr.msk.bf16.vlgmr.msra.gmra.mxu1 %vm1916_vm12, %v4945_v14  ;;  %v2106_v26 = vpop.permute.xlu0 %2105  ;;  %v2045_v53 = vsel %vm1920_vm11, %v2040_v39, 0 }
 0x438   : > { %1999 = vmatpush1.bf16.msra.mxu1 %v1979_v44  ;;  %2016 = vmatprep.mubr.bf16.mxu1 %v5155_v17 }
 0x439   : > { %v2108_v50 = vpop.permute.xlu1 %2107  ;;  %4170 = vmatprep.subr.msk.bf16.mxu1 %vm1920_vm11, %v2038_v7 }
 0x43a   : > { %v2110_v52 = vsel %vm2109_vm13, %v2106_v26, %v2108_v50  ;;  %4175 = vmatprep.subr.msk.bf16.mxu0 %vm1920_vm11, %v2108_v50 }
 0x43b   : > { %v2115_v23 = vsel %vm1920_vm11, %v2110_v52, 0  ;;  %v2176_v12 = vpop.permute.xlu0 %2175 }
 0x43c   : > { %2135 = vmatpush1.bf16.msra.mxu0 %v2115_v23 }
 0x43d   : > { %v2178_v46 = vpop.permute.xlu1 %2177 }
 0x43e   : > { %v2180_v41 = vsel %vm2179_vm15, %v2176_v12, %v2178_v46 }
 0x43f   : > { %v2246_v18 = vpop.permute.xlu0 %2245  ;;  %4166 = vmatmul.mubr.msk.bf16.vlgmr.msra.gmra.mxu1 %vm1916_vm12, %v4946_v31  ;;  %4176 = vmatmul.mubr.msk.bf16.vlgmr.msra.gmra.mxu0 %vm1916_vm12, %v4947_v48  ;;  %v2185_v25 = vsel %vm1920_vm11, %v2180_v41, 0 }
 0x440   : > { %2065 = vmatpush1.bf16.msra.mxu1 %v2045_v53  ;;  %2082 = vmatprep.mubr.bf16.mxu1 %v5155_v17 }
 0x441   : > { %4180 = vmatprep.subr.msk.bf16.mxu1 %vm1920_vm11, %v2178_v46  ;;  %v2248_v28 = vpop.permute.xlu1 %2247  ;;  %2292 = vmatprep.mubr.bf16.mxu0 %v5155_v17 }
 0x442   : > { %v2250_v1 = vsel %vm2249_vm14, %v2246_v18, %v2248_v28  ;;  %4185 = vmatprep.subr.msk.bf16.mxu0 %vm1920_vm11, %v2248_v28 }
 0x443   : > { %v2255_v32 = vsel %vm1920_vm11, %v2250_v1, 0  ;;  %v2316_v45 = vpop.permute.xlu0 %2315 }
 0x444   : > { %2275 = vmatpush1.bf16.msra.mxu0 %v2255_v32 }
 0x445   : > { %v2318_v9 = vpop.permute.xlu1 %2317 }
 0x446   : > { %v2320_v55 = vsel %vm2319_vm3, %v2316_v45, %v2318_v9 }
 0x447   : > { %4171 = vmatmul.mubr.msk.bf16.vlgmr.msra.gmra.mxu1 %vm1916_vm12, %v4948_v11  ;;  %4186 = vmatmul.mubr.msk.bf16.vlgmr.msra.gmra.mxu0 %vm1916_vm12, %v4949_v21  ;;  %v2386_v27 = vpop.permute.xlu0 %2385  ;;  %v2325_v10 = vsel %vm1920_vm11, %v2320_v55, 0 }
 0x448   : > { %2205 = vmatpush1.bf16.msra.mxu1 %v2185_v25  ;;  %2222 = vmatprep.mubr.bf16.mxu1 %v5155_v17 }
 0x449   : > { %4190 = vmatprep.subr.msk.bf16.mxu1 %vm1920_vm11, %v2318_v9  ;;  %v2388_v34 = vpop.permute.xlu1 %2387  ;;  %2432 = vmatprep.mubr.bf16.mxu0 %v5155_v17 }
 0x44a   : > { %v2390_v57 = vsel %vm2389_vm1, %v2386_v27, %v2388_v34  ;;  %4195 = vmatprep.subr.msk.bf16.mxu0 %vm1920_vm11, %v2388_v34 }
 0x44b   : > { %v2395_v3 = vsel %vm1920_vm11, %v2390_v57, 0  ;;  %v2456_v59 = vpop.permute.xlu0 %2455 }
 0x44c   : > { %2415 = vmatpush1.bf16.msra.mxu0 %v2395_v3 }
 0x44d   : > { %2686 = vmatprep.subr.bf16.mxu0 %v5155_v17  ;;  %v2458_v60 = vpop.permute.xlu1 %2457 }
 0x44e   : > { %v2460_v58 = vsel %vm576_vm2, %v2456_v59, %v2458_v60  ;;  %vm2680_vm2 = vcmask 1040384  }
 0x44f   : > { %4181 = vmatmul.mubr.msk.bf16.vlgmr.msra.gmra.mxu1 %vm1916_vm12, %v4950_v47  ;;  %4196 = vmatmul.mubr.msk.bf16.vlgmr.msra.gmra.mxu0 %vm1916_vm12, %v4952_v20  ;;  %v2465_v63 = vsel %vm1920_vm11, %v2460_v58, 0 }
 0x450   : > { %2345 = vmatpush1.bf16.msra.mxu1 %v2325_v10  ;;  %2362 = vmatprep.mubr.bf16.mxu1 %v5155_v17 }
 0x451   : > { %4200 = vmatprep.subr.msk.bf16.mxu1 %vm1920_vm11, %v2458_v60 }
 0x457   : > { %4191 = vmatmul.mubr.msk.bf16.vlgmr.msra.gmra.mxu1 %vm1916_vm12, %v4951_v0 }
 0x458   : > { %2485 = vmatpush1.bf16.msra.mxu1 %v2465_v63  ;;  %2502 = vmatprep.mubr.bf16.mxu1 %v5155_v17  ;;  %v2522_v0 = vpop.permute.xlu0 %2521 }
 0x45f   : > { %4201 = vmatmul.mubr.msk.bf16.vlgmr.msra.gmra.mxu1 %vm1916_vm12, %v4953_v40 }
 0x4f7   : > { %v1961_v54 = vpop.f32.mrf.mxu1 }
 0x4f9   : > { %v1963_v61 = vpop.f32.mrf.mxu1 }
 0x4fb   : > { %v1965_v24 = vpop.f32.mrf.mxu1 }
 0x4fd   : > { %v1967_v56 = vpop.f32.mrf.mxu1 }
 0x4ff   : > { %v2018_v30 = vpop.f32.mrf.mxu1  ;;  %v2154_v19 = vpop.f32.mrf.mxu0 }
 0x500   : > { %v2019_v16 = vadd.f32 %v2018_v30, %v1961_v54 }
 0x501   : > { %v2020_v8 = vpop.f32.mrf.mxu1  ;;  %v2156_v22 = vpop.f32.mrf.mxu0 }
 0x502   : > { %v2021_v37 = vadd.f32 %v2020_v8, %v1963_v61  ;;  %v2527_v61 = vpop.permute.xlu1 %2526 }
 0x503   : > { %v2022_v6 = vpop.f32.mrf.mxu1  ;;  %v2158_v33 = vpop.f32.mrf.mxu0 }
 0x504   : > { %v2023_v15 = vadd.f32 %v2022_v6, %v1965_v24 }
 0x505   : > { %v2024_v35 = vpop.f32.mrf.mxu1  ;;  %v2160_v2 = vpop.f32.mrf.mxu0 }
 0x506   : > { %v2025_v14 = vadd.f32 %v2024_v35, %v1967_v56 }
 0x507   : > { %v2084_v29 = vpop.f32.mrf.mxu1  ;;  %v2294_v51 = vpop.f32.mrf.mxu0 }
 0x508   : > { %v2093_v4 = vadd.f32 %v2084_v29, %v2019_v16  ;;  %v4955_v16 = vld [vmem:[%s6693_s6 + $0x30] sm:$0xff]  }
 0x509   : > { %v2086_v62 = vpop.f32.mrf.mxu1  ;;  %v2296_v36 = vpop.f32.mrf.mxu0 }
 0x50a   : > { %v2094_v42 = vadd.f32 %v2086_v62, %v2021_v37  ;;  %v2163_v7 = vadd.f32 %v2154_v19, %v2093_v4  ;;  %v4954_v62 = vld [vmem:[%s6693_s6 + $0x38] sm:$0xff]   ;;  %v4956_v37 = vld [vmem:[%s6693_s6 + $0x28] sm:$0xff]   ;;  %v4957_v4 = vld [vmem:[%s6693_s6 + $0x20] sm:$0xff]  }
 0x50b   : > { %v2088_v49 = vpop.f32.mrf.mxu1  ;;  %v2298_v43 = vpop.f32.mrf.mxu0  ;;  %2687 = vmatpush1.bf16.msra.mxu0 %v4954_v62 }
 0x50c   : > { %v2095_v26 = vadd.f32 %v2088_v49, %v2023_v15  ;;  %v2164_v52 = vadd.f32 %v2156_v22, %v2094_v42  ;;  %2688 = vmatprep.subr.bf16.mxu0 %v5155_v17  ;;  %v4960_v15 = vld [vmem:[%s6693_s6 + $0x8] sm:$0xff]   ;;  %v4961_v42 = vld [vmem:[%s6693_s6] sm:$0xff]  }
 0x50d   : > { %v2090_v13 = vpop.f32.mrf.mxu1  ;;  %v2300_v50 = vpop.f32.mrf.mxu0 }
 0x50e   : > { %v2096_v23 = vadd.f32 %v2090_v13, %v2025_v14  ;;  %v2165_v48 = vadd.f32 %v2158_v33, %v2095_v26  ;;  %v2682_v14 = vsel %vm2680_vm2, 65535, %v5155_v17  ;;  %v4963_v26 = vld [vmem:[%s6693_s6 + $0x50] sm:$0xff]  }
 0x50f   : > { %v2224_v38 = vpop.f32.mrf.mxu1  ;;  %v2434_v53 = vpop.f32.mrf.mxu0  ;;  %2689 = vmatpush1.bf16.msra.mxu0 %v4955_v16  ;;  %v4976_v16 = vld [vmem:[%s6694_s7] sm:$0xff]  }
 0x510   : > { %v2233_v12 = vadd.f32 %v2224_v38, %v2163_v7  ;;  %v2166_v18 = vadd.f32 %v2160_v2, %v2096_v23  ;;  %2690 = vmatprep.subr.bf16.mxu0 %v5155_v17  ;;  %v4958_v38 = vld [vmem:[%s6693_s6 + $0x18] sm:$0xff]  }
 0x511   : > { %v2226_v5 = vpop.f32.mrf.mxu1  ;;  %v2436_v9 = vpop.f32.mrf.mxu0 }
 0x512   : > { %v2234_v39 = vadd.f32 %v2226_v5, %v2164_v52  ;;  %v2303_v28 = vadd.f32 %v2294_v51, %v2233_v12  ;;  %v4962_v5 = vld [vmem:[%s6693_s6 + $0x58] ss:$0 sps:$4 sm:$0x11]  }
 0x513   : > { %v2228_v44 = vpop.f32.mrf.mxu1  ;;  %v2438_v20 = vpop.f32.mrf.mxu0  ;;  %2691 = vmatpush1.bf16.msra.mxu0 %v4956_v37  ;;  %v2684_v7 = vand.u32 %v4962_v5, %v2682_v14  ;;  %v4978_v37 = vld [vmem:[%s6694_s7 + $0x38] ss:$0 sps:$4 sm:$0x33]   ;;  %v4981_v5 = vld [vmem:[%s6694_s7 + $0xd0] sm:$0xff]   ;;  %v4982_v14 = vld [vmem:[%s6694_s7 + $0x28] sm:$0xff]  }
 0x514   : > { %v2235_v1 = vadd.f32 %v2228_v44, %v2165_v48  ;;  %v2304_v45 = vadd.f32 %v2296_v36, %v2234_v39  ;;  %2692 = vmatprep.subr.bf16.mxu0 %v5155_v17  ;;  %v4965_v48 = vld [vmem:[%s6693_s6 + $0x40] sm:$0xff]  }
 0x515   : > { %v2230_v31 = vpop.f32.mrf.mxu1  ;;  %v2440_v24 = vpop.f32.mrf.mxu0 }
 0x516   : > { %v2236_v11 = vadd.f32 %v2230_v31, %v2166_v18  ;;  %v2305_v25 = vadd.f32 %v2298_v43, %v2235_v1  ;;  %v4959_v43 = vld [vmem:[%s6693_s6 + $0x10] sm:$0xff]   ;;  %v4966_v1 = vld [vmem:[%s6694_s7 + $0x24] ss:$0 sps:$4 sm:$0x33]  }
 0x517   : > { %v2364_v46 = vpop.f32.mrf.mxu1  ;;  %2693 = vmatpush1.bf16.msra.mxu0 %v4957_v4  ;;  %v4979_v4 = vld [vmem:[%s6694_s7 + $0xd8] ss:$0 sps:$4 sm:$0x33]  }
 0x518   : > { %v2373_v21 = vadd.f32 %v2364_v46, %v2303_v28  ;;  %v2306_v57 = vadd.f32 %v2300_v50, %v2236_v11  ;;  %2694 = vmatprep.subr.bf16.mxu0 %v5155_v17  ;;  %v4964_v50 = vld [vmem:[%s6693_s6 + $0x48] sm:$0xff]   ;;  %v5171_v11 = vmov 0.0  }
 0x519   : > { %v2366_v32 = vpop.f32.mrf.mxu1  ;;  %4439 = vmatprep.subr.bf16.mxu1 %v5171_v11  ;;  %4445 = vmatprep.mubr.msk.bf16.mxu1 %vm5172_vm5, %v5171_v11 }
 0x51a   : > { %v2374_v27 = vadd.f32 %v2366_v32, %v2304_v45  ;;  %v2443_v3 = vadd.f32 %v2434_v53, %v2373_v21  ;;  %v2763_v21 = vsel %vm2761_vm4, %v4966_v1, 0 }
 0x51b   : > { %v2368_v41 = vpop.f32.mrf.mxu1  ;;  %2695 = vmatpush1.bf16.msra.mxu0 %v4958_v38  ;;  %4440 = vmatpush3.bf16.msra.mxu1 %v2763_v21  ;;  %v4993_v21 = vld [vmem:[%s6694_s7 + $0x120] sm:$0xff]  }
 0x51c   : > { %v2375_v47 = vadd.f32 %v2368_v41, %v2305_v25  ;;  %v2444_v10 = vadd.f32 %v2436_v9, %v2374_v27  ;;  %2696 = vmatprep.subr.bf16.mxu0 %v5155_v17  ;;  %4441 = vmatprep.subr.bf16.mxu1 %v5171_v11 }
 0x51d   : > { %v2370_v34 = vpop.f32.mrf.mxu1 }
 0x51e   : > { %v2376_v60 = vadd.f32 %v2370_v34, %v2306_v57  ;;  %v2445_v63 = vadd.f32 %v2438_v20, %v2375_v47  ;;  %v4967_v20 = vld [vmem:[%s6694_s7 + $0x88] ss:$0 sps:$4 sm:$0x33]  }
 0x51f   : > { %v2504_v55 = vpop.f32.mrf.mxu1  ;;  %2697 = vmatpush1.bf16.msra.mxu0 %v4959_v43  ;;  %v2892_v43 = vsel %vm2761_vm4, %v4978_v37, 0 }
 0x520   : > { %v2513_v59 = vadd.f32 %v2504_v55, %v2443_v3  ;;  %v2446_v30 = vadd.f32 %v2440_v24, %v2376_v60  ;;  %2698 = vmatprep.subr.bf16.mxu0 %v5155_v17  ;;  %v4970_v24 = vld [vmem:[%s6694_s7 + $0x14] sm:$0xff]  }
 0x521   : > { %v2506_v58 = vpop.f32.mrf.mxu1 }
 0x522   : > { %v6292_v40 = vadd.f32 %v2522_v0, %v2513_v59  ;;  %v2514_v54 = vadd.f32 %v2506_v58, %v2444_v10 }
 0x523   : > { %v2508_v56 = vpop.f32.mrf.mxu1  ;;  %2699 = vmatpush1.bf16.msra.mxu0 %v4960_v15  ;;  %v3444_v15 = vsel %vm2761_vm4, %v4979_v4, 0  ;;  %v5015_v4 = vld [vmem:[#allocation5 + $0x30] sm:$0xff]  }
 0x524   : > { %v2530_v19 = vadd.f32 %v2522_v0, %v2514_v54  ;;  %v2515_v8 = vadd.f32 %v2508_v56, %v2445_v63  ;;  %v2533_v6 = vmax.f32 %v6292_v40, 0.0  ;;  %2700 = vmatprep.subr.bf16.mxu0 %v5155_v17  ;;  %v3168_v40 = vsel %vm2761_vm4, %v4967_v20, 0  ;;  %v4968_v54 = vld [vmem:[%s6694_s7 + $0x1c] sm:$0xff]  }
 0x525   : > { %v2510_v22 = vpop.f32.mrf.mxu1  ;;  %4442 = vmatpush3.bf16.msra.mxu1 %v4968_v54  ;;  %v4971_v56 = vld [vmem:[%s6694_s7 + $0x78] sm:$0xff]  }
 0x526   : > { %v2534_v33 = vmax.f32 %v2530_v19, 0.0  ;;  %v6295_v35 = vadd.f32 %v2527_v61, %v2515_v8  ;;  %v2516_v2 = vadd.f32 %v2510_v22, %v2446_v30  ;;  %4443 = vmatprep.subr.bf16.mxu1 %v5171_v11  ;;  %v4972_v8 = vld [vmem:[%s6694_s7 + $0x10] ss:$0 sps:$4 sm:$0x33]   ;;  %v5004_v54 = vld [vmem:[%s6694_s7 + $0xb4] sm:$0xff]  }
 0x527   : > { %2701 = vmatpush1.bf16.msra.mxu0 %v4961_v42  ;;  %v4973_v22 = vld [vmem:[%s6694_s7 + $0xb0] ss:$0 sps:$4 sm:$0x33]   ;;  %v4999_v20 = vld [vmem:[%s6694_s7 + $0x9c] ss:$0 sps:$4 sm:$0x33]  }
 0x528   : > { %v4751_v29 = vpack.i.bf16 %v2534_v33, %v2533_v6  ;;  %v2532_v51 = vadd.f32 %v2527_v61, %v2516_v2  ;;  %v2535_v49 = vmax.f32 %v6295_v35, 0.0  ;;  %2710 = vmatprep.subr.bf16.mxu0 %v5155_v17  ;;  %v4969_v61 = vld [vmem:[%s6694_s7 + $0x80] sm:$0xff]   ;;  %v3306_v62 = vsel %vm2761_vm4, %v4973_v22, 0  ;;  %v4980_v42 = vld [vmem:[%s6694_s7 + $0x30] sm:$0xff]  }
 0x529   : > { %4444 = vmatpush3.bf16.msra.mxu1 %v4970_v24 }
 0x52a   : > { %v2536_v36 = vmax.f32 %v2532_v51, 0.0  ;;  %4752 = vrot.lane.b32.xlu0 %v4751_v29, %s5157_s14  ;;  %4449 = vmatprep.subr.bf16.mxu1 %v5171_v11  ;;  %v2823_v29 = vsel %vm2761_vm4, %v4972_v8, 0  ;;  %v5008_v8 = vld [vmem:[%s6694_s7 + $0x114] ss:$0 sps:$4 sm:$0x33]  }
 0x52b   : > { %2711 = vmatpush2.bf16.msra.mxu0 %v2684_v7  ;;  %v4983_v7 = vld [vmem:[%s6694_s7 + $0xc8] sm:$0xff]  }
 0x52c   : > { %v4756_v13 = vpack.i.bf16 %v2536_v36, %v2535_v49  ;;  %2712 = vmatprep.subr.bf16.mxu0 %v5155_v17 }
 0x52e   : > { %4757 = vrot.lane.b32.xlu1 %v4756_v13, %s5157_s14  ;;  %v4977_v13 = vld [vmem:[%s6694_s7 + $0xa0] sm:$0xff]   ;;  %s5078_s14 = sshll.u32 %s5173_s13, 4  ;;  %s5079_s14 = int_to_ptr.vmem [resolvable:$false] %s5078_s14 }
 0x52f   : > { %2713 = vmatpush2.bf16.msra.mxu0 %v4963_v26  ;;  %v4984_v26 = vld [vmem:[%s6694_s7 + $0x4c] ss:$0 sps:$4 sm:$0x33]   ;;  %s5080_s22 = scalar_lea.vmem %s5079_s14, 32  ;;  %p5081_p8 = scmp.lt.s32.totalorder %s6643_s17, %s5079_s14 }
 0x530   : > { %2714 = vmatprep.subr.bf16.mxu0 %v5155_v17  ;;  %p5082_p11 = scmp.lt.s32.totalorder %s5080_s22, %s5074_s29 }
 0x532   : > { %p5083_p0 = por %p5082_p11, %p5081_p8 }
 0x533   : > { %2715 = vmatpush2.bf16.msra.mxu0 %v4964_v50 }
 0x534   : > { %2716 = vmatprep.subr.bf16.mxu0 %v5155_v17  ;;  %p5084_p1 = pnand %p5083_p0, %p5077_p7 }
 0x537   : > { %2717 = vmatpush2.bf16.msra.mxu0 %v4965_v48  ;;  %v4987_v48 = vld [vmem:[%s6694_s7 + $0xf8] sm:$0xff]  }
 0x538   : > { %4499 = vmatprep.subr.bf16.mxu0 %v5171_v11 }
 0x59c   : > { %v4753_v44 = vpop.permute.xlu0 %4752 }
 0x59d   : > { %v4755_v52 = vunpack.i.h.bf16 %v4753_v44  ;;  %v4754_v23 = vunpack.i.l.bf16 %v4753_v44  ;;  %v4985_v44 = vld [vmem:[%s6694_s7 + $0x100] ss:$0 sps:$4 sm:$0x33]  }
 0x59f   : > { %v2556_v12 = vmax.f32 %v2534_v33, %v4755_v52  ;;  %v2549_v31 = vsel %vm456_vm0, %v4754_v23, %v4755_v52  ;;  %v2961_v23 = vsel %vm2761_vm4, %v4984_v26, 0 }
 0x5a0   : > { %v2555_v39 = vmax.f32 %v2533_v6, %v2549_v31  ;;  %v4758_v46 = vpop.permute.xlu1 %4757  ;;  %v4986_v31 = vld [vmem:[%s6694_s7 + $0x44] sm:$0xff]  }
 0x5a1   : > { %v4760_v53 = vunpack.i.h.bf16 %v4758_v46  ;;  %v4759_v18 = vunpack.i.l.bf16 %v4758_v46  ;;  %v4989_v46 = vld [vmem:[%s6694_s7 + $0xf0] sm:$0xff]  }
 0x5a2   : > { %v4761_v28 = vpack.i.bf16 %v2556_v12, %v2555_v39 }
 0x5a3   : > { %v2558_v32 = vmax.f32 %v2536_v36, %v4760_v53  ;;  %v2550_v45 = vsel %vm456_vm0, %v4759_v18, %v4760_v53  ;;  %vm2676_vm0 = vcmask 400384   ;;  %v4975_v36 = vld [vmem:[%s6694_s7 + $0xa8] sm:$0xff]   ;;  %v4990_v53 = vld [vmem:[%s6694_s7 + $0x60] ss:$0 sps:$4 sm:$0x33]  }
 0x5a4   : > { %v2557_v17 = vmax.f32 %v2535_v49, %v2550_v45  ;;  %4762 = vrot.lane.b32.xlu0 %v4761_v28, %s5166_s21  ;;  %v4974_v49 = vld [vmem:[%s6694_s7 + $0x8] sm:$0xff]  }
 0x5a5   : > { %v4991_v18 = vld [vmem:[%s6694_s7 + $0x128] ss:$0 sps:$4 sm:$0x33]  }
 0x5a6   : > { %v4766_v41 = vpack.i.bf16 %v2558_v32, %v2557_v17  ;;  %v3720_v45 = vsel %vm2761_vm4, %v4991_v18, 0 }
 0x5a8   : > { %4767 = vrot.lane.b32.xlu1 %v4766_v41, %s5166_s21  ;;  %v4994_v41 = vld [vmem:[%s6694_s7 + $0x50] sm:$0xff]  }
 0x616   : > { %v4763_v9 = vpop.permute.xlu0 %4762 }
 0x617   : > { %v4765_v25 = vunpack.i.h.bf16 %v4763_v9  ;;  %v4764_v27 = vunpack.i.l.bf16 %v4763_v9  ;;  %v4995_v9 = vld [vmem:[%s6694_s7 + $0x118] sm:$0xff]  }
 0x619   : > { %v2572_v57 = vsel %vm2109_vm13, %v4764_v27, %v4765_v25  ;;  %v2579_v55 = vmax.f32 %v2556_v12, %v4765_v25  ;;  %v3582_v12 = vsel %vm2761_vm4, %v4985_v44, 0  ;;  %v4996_v25 = vld [vmem:[%s6694_s7 + $0x74] ss:$0 sps:$4 sm:$0x33]  }
 0x61a   : > { %v4768_v34 = vpop.permute.xlu1 %4767  ;;  %v2578_v59 = vmax.f32 %v2555_v39, %v2572_v57  ;;  %v4988_v39 = vld [vmem:[%s6694_s7 + $0x3c] sm:$0xff]   ;;  %v3099_v57 = vsel %vm2761_vm4, %v4996_v25, 0 }
 0x61b   : > { %v4770_v3 = vunpack.i.h.bf16 %v4768_v34  ;;  %v4769_v47 = vunpack.i.l.bf16 %v4768_v34 }
 0x61d   : > { %v2581_v10 = vmax.f32 %v2558_v32, %v4770_v3  ;;  %v2573_v60 = vsel %vm2109_vm13, %v4769_v47, %v4770_v3  ;;  %v3030_v32 = vsel %vm2761_vm4, %v4990_v53, 0  ;;  %v4997_v3 = vld [vmem:[%s6694_s7 + $0x6c] sm:$0xff]   ;;  %v4998_v47 = vld [vmem:[%s6694_s7 + $0x64] sm:$0xff]  }
 0x61e   : > { %v2580_v0 = vmax.f32 %v2557_v17, %v2573_v60  ;;  %v4992_v17 = vld [vmem:[%s6694_s7 + $0x58] sm:$0xff]  }
 0x61f   : > { %v2583_v58 = vpack.c.bf16 %v2581_v10, %v2579_v55  ;;  %v3237_v10 = vsel %vm2761_vm4, %v4999_v20, 0  ;;  %v5000_v60 = vld [vmem:[%s6694_s7 + $0x94] sm:$0xff]  }
 0x620   : > { %v2582_v63 = vpack.c.bf16 %v2580_v0, %v2578_v59  ;;  %v5001_v59 = vld [vmem:[%s6694_s7 + $0x8c] sm:$0xff]   ;;  %v5002_v0 = vld [vmem:[%s6694_s7 + $0xc4] ss:$0 sps:$4 sm:$0x33]  }
 0x621   : > { %4214 = vmatprep.mubr.msk.bf16.mxu0 %vm2676_vm0, %v2583_v58 }
 0x622   : > { %2719 = vmatmul.mubr.bf16.vlgmr.msra.gmra.mxu0 %v2582_v63  ;;  %v3375_v63 = vsel %vm2761_vm4, %v5002_v0, 0 }
 0x623   : > { %4500 = vmatpush3.bf16.msra.mxu0 %v3168_v40  ;;  %4505 = vmatprep.mubr.msk.bf16.mxu0 %vm5172_vm5, %v5171_v11  ;;  %v5003_v40 = vld [vmem:[%s6694_s7 + $0xbc] sm:$0xff]  }
 0x624   : > { %4501 = vmatprep.subr.bf16.mxu0 %v5171_v11 }
 0x627   : > { %4502 = vmatpush3.bf16.msra.mxu0 %v4969_v61  ;;  %v5005_v61 = vld [vmem:[%s6694_s7 + $0xec] ss:$0 sps:$4 sm:$0x33]  }
 0x628   : > { %4503 = vmatprep.subr.bf16.mxu0 %v5171_v11 }
 0x62b   : > { %4504 = vmatpush3.bf16.msra.mxu0 %v4971_v56  ;;  %v3513_v56 = vsel %vm2761_vm4, %v5005_v61, 0 }
 0x62c   : > { %4519 = vmatprep.subr.bf16.mxu0 %v5171_v11 }
 0x6e2   : > { %v2720_v30 = vpop.f32.mrf.mxu0 }
 0x6e4   : > { %v2722_v19 = vpop.f32.mrf.mxu0 }
 0x6e5   : > { %v5007_v19 = vld [vmem:[%s6694_s7 + $0xdc] sm:$0xff]  }
 0x6e6   : > { %v2723_v6 = vpop.f32.mrf.mxu0 }
 0x6e7   : > { %v6392_v33 = vpack.c.bf16 %v2723_v6, %v2720_v30  ;;  %v5006_v30 = vld [vmem:[%s6694_s7 + $0xe4] sm:$0xff]   ;;  %v3651_v6 = vsel %vm2761_vm4, %v5008_v8, 0 }
 0x6e8   : > { %v2725_v35 = vpop.f32.mrf.mxu0 }
 0x6e9   : > { %v6395_v2 = vshrl.u32 %v6392_v33, 16  ;;  %v3148_v51 = vrot.slane %v6392_v33, 3  ;;  %v3286_v38 = vrot.slane %v6392_v33, 4  ;;  %v2872_v50 = vrot.slane %v6392_v33, 1  ;;  %v5010_v35 = vld [vmem:[%s6694_s7 + $0x104] sm:$0xff]  }
 0x6ea   : > { %v3424_v52 = vrot.slane %v6392_v33, 5  ;;  %v3562_v1 = vrot.slane %v6392_v33, 6  ;;  %v3010_v27 = vrot.slane %v6392_v33, 2  ;;  %v3700_v34 = vrot.slane %v6392_v33, 7 }
 0x6eb   : > { %4446 = vmatmul.mubr.msk.bf16.vlgmr.msra.gmra.mxu1 %vm2757_vm6, %v6395_v2  ;;  %4506 = vmatmul.mubr.msk.bf16.vlgmr.msra.gmra.mxu0 %vm2757_vm6, %v3148_v51  ;;  %v2941_v28 = vrot.slane %v6395_v2, 1  ;;  %v3079_v55 = vrot.slane %v6395_v2, 2  ;;  %v3217_v58 = vrot.slane %v6395_v2, 3  ;;  %v3355_v24 = vrot.slane %v6395_v2, 4 }
 0x6ec   : > { %4450 = vmatpush3.bf16.msra.mxu1 %v2823_v29  ;;  %4520 = vmatpush3.bf16.msra.mxu0 %v3306_v62  ;;  %v3493_v22 = vrot.slane %v6395_v2, 5  ;;  %v5011_v29 = vld [vmem:[%s6694_s7 + $0x13c] ss:$0 sps:$4 sm:$0x33]   ;;  %v3631_v51 = vrot.slane %v6395_v2, 6 }
 0x6ed   : > { %4451 = vmatprep.subr.bf16.mxu1 %v5171_v11  ;;  %4521 = vmatprep.subr.bf16.mxu0 %v5171_v11  ;;  %v3789_v62 = vsel %vm2761_vm4, %v5011_v29, 0 }
 0x6ee   : > { %4455 = vmatprep.mubr.msk.bf16.mxu1 %vm5172_vm5, %v5171_v11  ;;  %4525 = vmatprep.mubr.msk.bf16.mxu0 %vm5172_vm5, %v5171_v11 }
 0x6f0   : > { %4452 = vmatpush3.bf16.msra.mxu1 %v4974_v49  ;;  %4522 = vmatpush3.bf16.msra.mxu0 %v4975_v36  ;;  %v5012_v49 = vld [vmem:[%s6694_s7 + $0x134] sm:$0xff]   ;;  %v5013_v36 = vld [vmem:[%s6694_s7 + $0x12c] sm:$0xff]  }
 0x6f1   : > { %4453 = vmatprep.subr.bf16.mxu1 %v5171_v11  ;;  %4523 = vmatprep.subr.bf16.mxu0 %v5171_v11 }
 0x6f4   : > { %4454 = vmatpush3.bf16.msra.mxu1 %v4976_v16  ;;  %4524 = vmatpush3.bf16.msra.mxu0 %v4977_v13  ;;  %v3769_v16 = vrot.slane %v6395_v2, 7  ;;  %v5014_v13 = vld [vmem:[#allocation5 + $0x38] ss:$0 sps:$4 sm:$0xff]  }
 0x6f5   : > { %4459 = vmatprep.subr.bf16.mxu1 %v5171_v11  ;;  %4539 = vmatprep.subr.bf16.mxu0 %v5171_v11  ;;  %v3900_v37 = vsel %vm3898_vm7, %v5014_v13, 0  ;;  %v5018_v2 = vld [vmem:[#allocation5 + $0x18] sm:$0xff]  }
 0x6f7   : > { %4456 = vmatmul.mubr.msk.bf16.vlgmr.msra.gmra.mxu1 %vm2757_vm6, %v6392_v33  ;;  %4526 = vmatmul.mubr.msk.bf16.vlgmr.msra.gmra.mxu0 %vm2757_vm6, %v3286_v38  ;;  %v5009_v33 = vld [vmem:[%s6694_s7 + $0x10c] sm:$0xff]  }
 0x6f8   : > { %4460 = vmatpush3.bf16.msra.mxu1 %v2892_v43  ;;  %4540 = vmatpush3.bf16.msra.mxu0 %v3444_v15  ;;  %v5016_v38 = vld [vmem:[#allocation5 + $0x28] sm:$0xff]   ;;  %v5017_v43 = vld [vmem:[#allocation5 + $0x20] sm:$0xff]   ;;  %v5019_v15 = vld [vmem:[#allocation5 + $0x10] sm:$0xff]  }
 0x6f9   : > { %4461 = vmatprep.subr.bf16.mxu1 %v5171_v11  ;;  %4541 = vmatprep.subr.bf16.mxu0 %v5171_v11 }
 0x6fa   : > { %4465 = vmatprep.mubr.msk.bf16.mxu1 %vm5172_vm5, %v5171_v11  ;;  %4545 = vmatprep.mubr.msk.bf16.mxu0 %vm5172_vm5, %v5171_v11 }
 0x6fc   : > { %4462 = vmatpush3.bf16.msra.mxu1 %v4980_v42  ;;  %4542 = vmatpush3.bf16.msra.mxu0 %v4981_v5  ;;  %v5020_v42 = vld [vmem:[#allocation5 + $0x8] sm:$0xff]   ;;  %v5021_v5 = vld [vmem:[#allocation5] sm:$0xff]  }
 0x6fd   : > { %4463 = vmatprep.subr.bf16.mxu1 %v5171_v11  ;;  %4543 = vmatprep.subr.bf16.mxu0 %v5171_v11 }
 0x700   : > { %4464 = vmatpush3.bf16.msra.mxu1 %v4982_v14  ;;  %4544 = vmatpush3.bf16.msra.mxu0 %v4983_v7 }
 0x701   : > { %4469 = vmatprep.subr.bf16.mxu1 %v5171_v11  ;;  %4559 = vmatprep.subr.bf16.mxu0 %v5171_v11 }
 0x703   : > { %4466 = vmatmul.mubr.msk.bf16.vlgmr.msra.gmra.mxu1 %vm2757_vm6, %v2872_v50  ;;  %4546 = vmatmul.mubr.msk.bf16.vlgmr.msra.gmra.mxu0 %vm2757_vm6, %v3424_v52 }
 0x704   : > { %4470 = vmatpush3.bf16.msra.mxu1 %v2961_v23  ;;  %4560 = vmatpush3.bf16.msra.mxu0 %v3582_v12 }
 0x705   : > { %4471 = vmatprep.subr.bf16.mxu1 %v5171_v11  ;;  %4561 = vmatprep.subr.bf16.mxu0 %v5171_v11 }
 0x706   : > { %4475 = vmatprep.mubr.msk.bf16.mxu1 %vm5172_vm5, %v5171_v11  ;;  %4565 = vmatprep.mubr.msk.bf16.mxu0 %vm5172_vm5, %v5171_v11 }
 0x708   : > { %4472 = vmatpush3.bf16.msra.mxu1 %v4986_v31  ;;  %4562 = vmatpush3.bf16.msra.mxu0 %v4987_v48 }
 0x709   : > { %4473 = vmatprep.subr.bf16.mxu1 %v5171_v11  ;;  %4563 = vmatprep.subr.bf16.mxu0 %v5171_v11 }
 0x70c   : > { %4474 = vmatpush3.bf16.msra.mxu1 %v4988_v39  ;;  %4564 = vmatpush3.bf16.msra.mxu0 %v4989_v46 }
 0x70d   : > { %4479 = vmatprep.subr.bf16.mxu1 %v5171_v11  ;;  %4579 = vmatprep.subr.bf16.mxu0 %v5171_v11 }
 0x70f   : > { %4476 = vmatmul.mubr.msk.bf16.vlgmr.msra.gmra.mxu1 %vm2757_vm6, %v2941_v28  ;;  %4566 = vmatmul.mubr.msk.bf16.vlgmr.msra.gmra.mxu0 %vm2757_vm6, %v3562_v1 }
 0x710   : > { %4480 = vmatpush3.bf16.msra.mxu1 %v3030_v32  ;;  %4580 = vmatpush3.bf16.msra.mxu0 %v3720_v45 }
 0x711   : > { %4481 = vmatprep.subr.bf16.mxu1 %v5171_v11  ;;  %4581 = vmatprep.subr.bf16.mxu0 %v5171_v11 }
 0x712   : > { %4485 = vmatprep.mubr.msk.bf16.mxu1 %vm5172_vm5, %v5171_v11  ;;  %4585 = vmatprep.mubr.msk.bf16.mxu0 %vm5172_vm5, %v5171_v11 }
 0x714   : > { %4482 = vmatpush3.bf16.msra.mxu1 %v4992_v17  ;;  %4582 = vmatpush3.bf16.msra.mxu0 %v4993_v21 }
 0x715   : > { %4483 = vmatprep.subr.bf16.mxu1 %v5171_v11  ;;  %4583 = vmatprep.subr.bf16.mxu0 %v5171_v11 }
 0x718   : > { %4484 = vmatpush3.bf16.msra.mxu1 %v4994_v41  ;;  %4584 = vmatpush3.bf16.msra.mxu0 %v4995_v9 }
 0x719   : > { %4489 = vmatprep.subr.bf16.mxu1 %v5171_v11  ;;  %4599 = vmatprep.subr.bf16.mxu0 %v5171_v11 }
 0x71b   : > { %4486 = vmatmul.mubr.msk.bf16.vlgmr.msra.gmra.mxu1 %vm2757_vm6, %v3010_v27  ;;  %4586 = vmatmul.mubr.msk.bf16.vlgmr.msra.gmra.mxu0 %vm2757_vm6, %v3700_v34 }
 0x71c   : > { %4490 = vmatpush3.bf16.msra.mxu1 %v3099_v57  ;;  %4495 = vmatprep.mubr.msk.bf16.mxu1 %vm5172_vm5, %v5171_v11 }
 0x71d   : > { %4491 = vmatprep.subr.bf16.mxu1 %v5171_v11  ;;  %4615 = vmatprep.mubr.msk.bf16.mxu0 %vm5172_vm5, %v5171_v11 }
 0x71e   : > { %4600 = vmatpush3.bf16.msra.mxu0 %v3900_v37 }
 0x71f   : > { %4601 = vmatprep.subr.bf16.mxu0 %v5171_v11 }
 0x720   : > { %4492 = vmatpush3.bf16.msra.mxu1 %v4997_v3 }
 0x721   : > { %4493 = vmatprep.subr.bf16.mxu1 %v5171_v11 }
 0x722   : > { %4602 = vmatpush3.bf16.msra.mxu0 %v5015_v4 }
 0x723   : > { %4603 = vmatprep.subr.bf16.mxu0 %v5171_v11 }
 0x724   : > { %4494 = vmatpush3.bf16.msra.mxu1 %v4998_v47 }
 0x725   : > { %4509 = vmatprep.subr.bf16.mxu1 %v5171_v11 }
 0x726   : > { %4604 = vmatpush3.bf16.msra.mxu0 %v5016_v38 }
 0x727   : > { %4496 = vmatmul.mubr.msk.bf16.vlgmr.msra.gmra.mxu1 %vm2757_vm6, %v3079_v55  ;;  %4605 = vmatprep.subr.bf16.mxu0 %v5171_v11 }
 0x728   : > { %4510 = vmatpush3.bf16.msra.mxu1 %v3237_v10  ;;  %4515 = vmatprep.mubr.msk.bf16.mxu1 %vm5172_vm5, %v5171_v11 }
 0x729   : > { %4511 = vmatprep.subr.bf16.mxu1 %v5171_v11 }
 0x72a   : > { %4606 = vmatpush3.bf16.msra.mxu0 %v5017_v43 }
 0x72b   : > { %4607 = vmatprep.subr.bf16.mxu0 %v5171_v11 }
 0x72c   : > { %4512 = vmatpush3.bf16.msra.mxu1 %v5000_v60 }
 0x72d   : > { %4513 = vmatprep.subr.bf16.mxu1 %v5171_v11 }
 0x72e   : > { %4608 = vmatpush3.bf16.msra.mxu0 %v5018_v2 }
 0x72f   : > { %4609 = vmatprep.subr.bf16.mxu0 %v5171_v11 }
 0x730   : > { %4514 = vmatpush3.bf16.msra.mxu1 %v5001_v59 }
 0x731   : > { %4529 = vmatprep.subr.bf16.mxu1 %v5171_v11 }
 0x732   : > { %4610 = vmatpush3.bf16.msra.mxu0 %v5019_v15 }
 0x733   : > { %4516 = vmatmul.mubr.msk.bf16.vlgmr.msra.gmra.mxu1 %vm2757_vm6, %v3217_v58  ;;  %4611 = vmatprep.subr.bf16.mxu0 %v5171_v11 }
 0x734   : > { %4530 = vmatpush3.bf16.msra.mxu1 %v3375_v63  ;;  %4535 = vmatprep.mubr.msk.bf16.mxu1 %vm5172_vm5, %v5171_v11 }
 0x735   : > { %4531 = vmatprep.subr.bf16.mxu1 %v5171_v11 }
 0x736   : > { %4612 = vmatpush3.bf16.msra.mxu0 %v5020_v42 }
 0x737   : > { %4613 = vmatprep.subr.bf16.mxu0 %v5171_v11 }
 0x738   : > { %4532 = vmatpush3.bf16.msra.mxu1 %v5003_v40 }
 0x739   : > { %4533 = vmatprep.subr.bf16.mxu1 %v5171_v11 }
 0x73a   : > { %4614 = vmatpush3.bf16.msra.mxu0 %v5021_v5 }
 0x73c   : > { %4534 = vmatpush3.bf16.msra.mxu1 %v5004_v54 }
 0x73d   : > { %4549 = vmatprep.subr.bf16.mxu1 %v5171_v11 }
 0x73f   : > { %4536 = vmatmul.mubr.msk.bf16.vlgmr.msra.gmra.mxu1 %vm2757_vm6, %v3355_v24 }
 0x740   : > { %4550 = vmatpush3.bf16.msra.mxu1 %v3513_v56  ;;  %4555 = vmatprep.mubr.msk.bf16.mxu1 %vm5172_vm5, %v5171_v11 }
 0x741   : > { %4551 = vmatprep.subr.bf16.mxu1 %v5171_v11 }
 0x744   : > { %4552 = vmatpush3.bf16.msra.mxu1 %v5006_v30 }
 0x745   : > { %4553 = vmatprep.subr.bf16.mxu1 %v5171_v11 }
 0x748   : > { %4554 = vmatpush3.bf16.msra.mxu1 %v5007_v19 }
 0x749   : > { %4569 = vmatprep.subr.bf16.mxu1 %v5171_v11 }
 0x74b   : > { %4556 = vmatmul.mubr.msk.bf16.vlgmr.msra.gmra.mxu1 %vm2757_vm6, %v3493_v22 }
 0x74c   : > { %4570 = vmatpush3.bf16.msra.mxu1 %v3651_v6  ;;  %4575 = vmatprep.mubr.msk.bf16.mxu1 %vm5172_vm5, %v5171_v11 }
 0x74d   : > { %4571 = vmatprep.subr.bf16.mxu1 %v5171_v11 }
 0x750   : > { %4572 = vmatpush3.bf16.msra.mxu1 %v5009_v33 }
 0x751   : > { %4573 = vmatprep.subr.bf16.mxu1 %v5171_v11 }
 0x754   : > { %4574 = vmatpush3.bf16.msra.mxu1 %v5010_v35 }
 0x755   : > { %4589 = vmatprep.subr.bf16.mxu1 %v5171_v11 }
 0x757   : > { %4576 = vmatmul.mubr.msk.bf16.vlgmr.msra.gmra.mxu1 %vm2757_vm6, %v3631_v51 }
 0x758   : > { %4590 = vmatpush3.bf16.msra.mxu1 %v3789_v62  ;;  %4595 = vmatprep.mubr.msk.bf16.mxu1 %vm5172_vm5, %v5171_v11 }
 0x759   : > { %4591 = vmatprep.subr.bf16.mxu1 %v5171_v11 }
 0x75c   : > { %4592 = vmatpush3.bf16.msra.mxu1 %v5012_v49 }
 0x75d   : > { %4593 = vmatprep.subr.bf16.mxu1 %v5171_v11 }
 0x760   : > { %4594 = vmatpush3.bf16.msra.mxu1 %v5013_v36 }
 0x763   : > { %4596 = vmatmul.mubr.msk.bf16.vlgmr.msra.gmra.mxu1 %vm2757_vm6, %v3769_v16 }
 0x7ab   : > { %v2799_v14 = vpop.f32.mrf.mxu1  ;;  %v3204_v7 = vpop.f32.mrf.mxu0 }
 0x7ad   : > { %v4447_v26 = vpop.f32.mrf.mxu1  ;;  %v4507_v44 = vpop.f32.mrf.mxu0 }
 0x7af   : > { %v2802_v50 = vpop.f32.mrf.mxu1  ;;  %v3207_v52 = vpop.f32.mrf.mxu0 }
 0x7b1   : > { %v4448_v23 = vpop.f32.mrf.mxu1  ;;  %v4508_v12 = vpop.f32.mrf.mxu0 }
 0x7b7   : > { %v2859_v31 = vpop.f32.mrf.mxu1  ;;  %v3342_v48 = vpop.f32.mrf.mxu0 }
 0x7b8   : > { %v2860_v39 = vadd.f32 %v2859_v31, %v2799_v14 }
 0x7b9   : > { %v4457_v46 = vpop.f32.mrf.mxu1  ;;  %v4527_v53 = vpop.f32.mrf.mxu0 }
 0x7bb   : > { %v2862_v18 = vpop.f32.mrf.mxu1  ;;  %v3345_v28 = vpop.f32.mrf.mxu0 }
 0x7bd   : > { %v4458_v1 = vpop.f32.mrf.mxu1  ;;  %v4528_v32 = vpop.f32.mrf.mxu0 }
 0x7c3   : > { %v2928_v11 = vpop.f32.mrf.mxu1  ;;  %v3480_v45 = vpop.f32.mrf.mxu0 }
 0x7c4   : > { %v2934_v17 = vadd.f32 %v2928_v11, %v2860_v39 }
 0x7c5   : > { %v4467_v21 = vpop.f32.mrf.mxu1  ;;  %v4547_v41 = vpop.f32.mrf.mxu0 }
 0x7c7   : > { %v2931_v9 = vpop.f32.mrf.mxu1  ;;  %v3483_v25 = vpop.f32.mrf.mxu0 }
 0x7c9   : > { %v4468_v27 = vpop.f32.mrf.mxu1  ;;  %v4548_v34 = vpop.f32.mrf.mxu0 }
 0x7cf   : > { %v2997_v57 = vpop.f32.mrf.mxu1  ;;  %v3618_v3 = vpop.f32.mrf.mxu0 }
 0x7d0   : > { %v3003_v30 = vadd.f32 %v2997_v57, %v2934_v17 }
 0x7d1   : > { %v4477_v47 = vpop.f32.mrf.mxu1  ;;  %v4567_v20 = vpop.f32.mrf.mxu0 }
 0x7d3   : > { %v3000_v55 = vpop.f32.mrf.mxu1  ;;  %v3621_v10 = vpop.f32.mrf.mxu0 }
 0x7d5   : > { %v4478_v60 = vpop.f32.mrf.mxu1  ;;  %v4568_v59 = vpop.f32.mrf.mxu0 }
 0x7db   : > { %v3066_v0 = vpop.f32.mrf.mxu1  ;;  %v3756_v58 = vpop.f32.mrf.mxu0 }
 0x7dc   : > { %v3072_v19 = vadd.f32 %v3066_v0, %v3003_v30 }
 0x7dd   : > { %v4487_v63 = vpop.f32.mrf.mxu1  ;;  %v4587_v40 = vpop.f32.mrf.mxu0 }
 0x7df   : > { %v3069_v54 = vpop.f32.mrf.mxu1  ;;  %v3759_v61 = vpop.f32.mrf.mxu0 }
 0x7e1   : > { %v4488_v24 = vpop.f32.mrf.mxu1  ;;  %v4588_v56 = vpop.f32.mrf.mxu0 }
 0x7e7   : > { %v3135_v8 = vpop.f32.mrf.mxu1 }
 0x7e8   : > { %v3141_v22 = vadd.f32 %v3135_v8, %v3072_v19 }
 0x7e9   : > { %v4497_v6 = vpop.f32.mrf.mxu1 }
 0x7ea   : > { %v3210_v33 = vadd.f32 %v3204_v7, %v3141_v22 }
 0x7eb   : > { %v3138_v35 = vpop.f32.mrf.mxu1 }
 0x7ed   : > { %v4498_v29 = vpop.f32.mrf.mxu1 }
 0x7f3   : > { %v3273_v51 = vpop.f32.mrf.mxu1 }
 0x7f4   : > { %v3279_v62 = vadd.f32 %v3273_v51, %v3210_v33 }
 0x7f5   : > { %v4517_v49 = vpop.f32.mrf.mxu1 }
 0x7f6   : > { %v3348_v36 = vadd.f32 %v3342_v48, %v3279_v62 }
 0x7f7   : > { %v3276_v16 = vpop.f32.mrf.mxu1 }
 0x7f9   : > { %v4518_v13 = vpop.f32.mrf.mxu1 }
 0x7ff   : > { %v3411_v37 = vpop.f32.mrf.mxu1 }
 0x800   : > { %v3417_v4 = vadd.f32 %v3411_v37, %v3348_v36 }
 0x801   : > { %v4537_v38 = vpop.f32.mrf.mxu1 }
 0x802   : > { %v3486_v43 = vadd.f32 %v3480_v45, %v3417_v4 }
 0x803   : > { %v3414_v2 = vpop.f32.mrf.mxu1 }
 0x805   : > { %v4538_v15 = vpop.f32.mrf.mxu1 }
 0x80b   : > { %v3549_v42 = vpop.f32.mrf.mxu1 }
 0x80c   : > { %v3555_v5 = vadd.f32 %v3549_v42, %v3486_v43 }
 0x80d   : > { %v4557_v14 = vpop.f32.mrf.mxu1 }
 0x80e   : > { %v3624_v26 = vadd.f32 %v3618_v3, %v3555_v5 }
 0x80f   : > { %v3552_v44 = vpop.f32.mrf.mxu1 }
 0x811   : > { %v4558_v7 = vpop.f32.mrf.mxu1 }
 0x817   : > { %v3687_v50 = vpop.f32.mrf.mxu1 }
 0x818   : > { %v3693_v52 = vadd.f32 %v3687_v50, %v3624_v26 }
 0x819   : > { %v4577_v23 = vpop.f32.mrf.mxu1 }
 0x81a   : > { %v3762_v12 = vadd.f32 %v3756_v58, %v3693_v52 }
 0x81b   : > { %v3690_v31 = vpop.f32.mrf.mxu1 }
 0x81d   : > { %v4578_v48 = vpop.f32.mrf.mxu1 }
 0x823   : > { %v3825_v39 = vpop.f32.mrf.mxu1 }
 0x824   : > { %v3831_v46 = vadd.f32 %v3825_v39, %v3762_v12 }
 0x825   : > { %v4597_v53 = vpop.f32.mrf.mxu1 }
 0x826   : > { %v3832_v18 = vmax.f32 %v3831_v46, 0.0 }
 0x827   : > { %v3828_v28 = vpop.f32.mrf.mxu1 }
 0x828   : > { %v3833_v1 = vpack.c.bf16 %v3832_v18, %v3832_v18 }
 0x829   : > { %v4598_v32 = vpop.f32.mrf.mxu1 }
 0x82a   : > { %4616 = vmatmul.mubr.msk.bf16.vlgmr.msra.gmra.mxu0 %vm3894_vm8, %v3833_v1 }
 0x8ea   : > { %v3936_v11 = vpop.f32.mrf.mxu0 }
 0x8eb   : > { %3942 = vst [vmem:[%s350_s23] sm:$0x1] %v3936_v11 }
 0x8ec   : > { %v4617_v45 = vpop.f32.mrf.mxu0 }
 0x8ed   : > { %5087 = shalt.err (!%p5084_p1)
}
 0x8ee   : > { %s5088_s24 = scalar_lea.hbm %s6648_s27, 16  ;;  %s5092_s25 = scalar_lea.hbm %s6696_s9, 32 }
 0x8ef   : > { %p5089_p2 = scmp.ne.s32.totalorder %s6648_s27, %s5088_s24  ;;  %p5093_p5 = scmp.lt.s32.totalorder %s6648_s27, %s6696_s9 }
 0x8f0   : > { %p5094_p6 = scmp.lt.s32.totalorder %s5092_s25, %s5088_s24 }
 0x8f1   : > { %p5090_p3 = pnand %p5089_p2, %p6712_p13 }
 0x8f2   : > { %p5095_p10 = por %p5094_p6, %p5093_p5 }
 0x8f3   : > { %p5091_p9 = pneg %p5090_p3 }
 0x8f5   : > { %p5096_p12 = pnand %p5095_p10, %p5091_p9 }
 0x8f7   : > { %5099 = shalt.err (!%p5096_p12)
}
 0x8f8   : > { %4627 = dma.vmem_to_hbm [thread:$0]  (%p6712_p13), %s6643_s17, 16, %s6648_s27, %s3944_s28   ;;  %v3939_v17 = vpop.f32.mrf.mxu0 }
 0x8fa   : > { %v4618_v21 = vpop.f32.mrf.mxu0 }
 0x8fb PF: > { %p4644_p4 = scmp.ge.s32.totalorder %s5142_s12, 2  ;;  %s3968_s29 = sand.u32 1, %s5130_s30  }
 0x8fc   : > { %p6713_p7 = scmp.ne.s32.totalorder %s6703_s20, 0  ;;  %s3969_s13 = scalar_lea.sflag [#allocation4], %s3968_s29 }
 0x8fe   : > { %p4637_p8 = pnand %p4644_p4, %p6713_p7 }
 0x900   : > { %p4638_p11 = pneg %p4637_p8 }
 0x902   : > { %5125 = dma.done.wait (%p4638_p11), %s3969_s13, 16  }
 0x903   : > { %5127 = vsyncadd (%p4638_p11), %s3969_s13, 4294967280  ;;  %p21_p13 = scmp.ge.s32.totalorder %s5249_s15, 4   ;;  %s6714_s30 = smov %s5134_s10 }
 0x904   : > { %s6715_s10 = smov %s5138_s11  ;;  %s6716_s11 = smov %s5260_s18 }
 0x905   : > { %s6717_s12 = smov %s5249_s15  ;;  %23 = sbr.rel (!%p21_p13) target bundleno = 5 (0x5), region = 123 }
 0x90a   :  { %3973 = vsyncpa [#allocation3], 1 }
 0x90b   :  { %3975 = vsyncpa [#allocation3 + $0x1], 1 }
 0x90c   :  { %3976 = vsyncpa [#allocation6], 1 }
 0x90d   :  { %3977 = vsyncpa [#allocation4], 1 }
 0x90e   :  { %3979 = vsyncpa [#allocation4 + $0x1], 1 }

</bundles_post_ra>
